<compile_context>
chip_gen: v6e
topology: v6e:2x2x1
jax: 0.10.0
libtpu: 0.0.40
codegen_flags: <defaults>
</compile_context>

<pallas_src>
import jax
import jax.numpy as jnp
from jax.experimental import pallas as pl
from jax.experimental.pallas import tpu as pltpu


# ------------------------------- helpers --------------------------------------

def _round_up(n, m):
    return ((n + m - 1) // m) * m


_PARAM_ORDER = ("w1", "b1", "w2", "b2", "w3", "b3", "w4r", "b4")


# -------------------------------- kernel --------------------------------------

def _mish_to_bf16(x):
    """mish(x) = x * tanh(softplus(x)), returned as bf16 for the next MXU pass.

    With u = 1 + exp(min(x, 20)):  tanh(log u) = (u^2 - 1) / (u^2 + 1).
    The clamp at 20 already saturates the ratio to 1.0 in f32 (and mish(x) == x
    there), so no extra jnp.where is needed.  One EUP exp + one approx EUP
    reciprocal; the rational part stays f32 for fidelity.
    """
    u = 1.0 + jnp.exp(jnp.minimum(x, 20.0))
    u2 = u * u
    t = (u2 - 1.0) * pl.reciprocal(u2 + 1.0, approx=True)
    return (x * t).astype(jnp.bfloat16)


def _cql_qnet_kernel(x_ref,
                     w1_ref, b1_ref, w2_ref, b2_ref, w3_ref, b3_ref,
                     w4r_ref, b4_ref,
                     o_ref):
    """One Q-net (grid axis 0) x one batch tile (grid axis 1).

    4-layer MLP: Linear -> Mish -> Linear -> Mish -> Linear -> Mish -> Linear(H->1).
    bf16 MXU operands, f32 accumulation.  The H->1 head is a VPU multiply + lane
    reduction (avoids a lane-width-1 MXU pass); the (tile, 1) column store is a
    known minor cost — the lane-dense relayout was judged not worth the transpose
    for a 1-wide output.
    """
    x = x_ref[...]                                                  # (tile, K) bf16
    h = jnp.dot(x, w1_ref[0], preferred_element_type=jnp.float32) + b1_ref[0]
    h = _mish_to_bf16(h)
    h = jnp.dot(h, w2_ref[0], preferred_element_type=jnp.float32) + b2_ref[0]
    h = _mish_to_bf16(h)
    h = jnp.dot(h, w3_ref[0], preferred_element_type=jnp.float32) + b3_ref[0]
    h = _mish_to_bf16(h)
    # bf16 * f32 promotes to f32; reduce over lanes (H) -> (tile, 1).
    q = jnp.sum(h * w4r_ref[0], axis=-1, keepdims=True) + b4_ref[0]
    o_ref[0] = q.astype(o_ref.dtype)


# ------------------------------- wrapper ---------------------------------------

def cql_qnets_forward(state, action, goal, params, *, batch_tile=512):
    """Run the N stacked Q-nets described by `params` on (state, action, goal).

    params: dict of arrays with a leading net axis N (see init_qnet_params /
    _stack_params).  Returns q-values of shape (N, B, 1), float32.
    """
    B = state.shape[0]
    N, K, H = params["w1"].shape

    # Fused layer-1 input: one (B, K) bf16 slab (B*K elements -> negligible HBM
    # traffic) instead of three tiny-K matmuls inside the kernel.
    x = jnp.concatenate([state.astype(jnp.bfloat16),
                         action.astype(jnp.bfloat16),
                         goal.astype(jnp.bfloat16)], axis=-1)

    # Big default tile (total VMEM ~1 MiB << any chip's limit); shrink for small
    # batches but keep a multiple of 128 so bf16 sublane packing / MXU height stay
    # full.  No input padding: the ragged last block is bounds-masked by Pallas;
    # its unspecified pad rows are harmless ONLY because all math is row-wise and
    # pad-row outputs are never written back.
    batch_tile = max(128, _round_up(int(batch_tile), 128))
    tile = min(batch_tile, _round_up(B, 128))
    grid = (N, pl.cdiv(B, tile))

    def net_spec(arr):
        # Per-net parameter slab; constant over the inner batch-tile axis, so it
        # stays VMEM-resident and is only re-DMA'd when the net index changes.
        block = (1,) + arr.shape[1:]
        zeros = (0,) * (arr.ndim - 1)
        return pl.BlockSpec(block, lambda n, i, zeros=zeros: (n,) + zeros)

    param_args = [params[k] for k in _PARAM_ORDER]
    in_specs = ([pl.BlockSpec((tile, K), lambda n, i: (i, 0))]
                + [net_spec(p) for p in param_args])
    out_spec = pl.BlockSpec((1, tile, 1), lambda n, i: (n, i, 0))

    return pl.pallas_call(
        _cql_qnet_kernel,
        out_shape=jax.ShapeDtypeStruct((N, B, 1), jnp.float32),
        grid_spec=pltpu.PrefetchScalarGridSpec(
            num_scalar_prefetch=0,
            grid=grid,
            in_specs=in_specs,
            out_specs=out_spec,
        ),
        # Both axes are fully independent; on v7x the net axis lets qf1/qf2 run on
        # the two TensorCores even when the whole batch fits in a single tile.
        compiler_params=pltpu.CompilerParams(
            dimension_semantics=("parallel", "parallel")),
    )(x, *param_args)


# --------------------------- parameter setup -----------------------------------

def init_qnet_params(key, state_dim, action_dim, goal_dim, hidden_dim):
    """PyTorch nn.Linear-style init (U(-1/sqrt(fan_in), +1/sqrt(fan_in))) for one net.

    Weights are stored (in, out) — i.e. PyTorch's W.T — so the kernel computes
    x @ W + b.  Matmul weights are bf16 (hence NOT bit-comparable to an f32
    PyTorch critic); biases and the W4 reduction row stay f32.
    """
    in_dim = state_dim + action_dim + goal_dim
    k1, k2, k3, k4 = jax.random.split(key, 4)

    def linear(k, fan_in, fan_out):
        kw, kb = jax.random.split(k)
        bound = 1.0 / jnp.sqrt(jnp.float32(fan_in))
        w = jax.random.uniform(kw, (fan_in, fan_out), jnp.float32, -bound, bound)
        b = jax.random.uniform(kb, (1, fan_out), jnp.float32, -bound, bound)
        return w, b

    w1, b1 = linear(k1, in_dim, hidden_dim)
    w2, b2 = linear(k2, hidden_dim, hidden_dim)
    w3, b3 = linear(k3, hidden_dim, hidden_dim)
    w4, b4 = linear(k4, hidden_dim, 1)

    bf16 = jnp.bfloat16
    return dict(
        w1=w1.astype(bf16), b1=b1,          # fused (in_dim, H): single layer-1 matmul
        w2=w2.astype(bf16), b2=b2,
        w3=w3.astype(bf16), b3=b3,
        w4r=jnp.transpose(w4),              # (1, H) f32 row for the lane reduction
        b4=b4,                              # (1, 1) f32
    )


def _stack_params(param_dicts):
    """Stack per-net param dicts along a new leading net axis."""
    return jax.tree_util.tree_map(lambda *xs: jnp.stack(xs, axis=0), *param_dicts)


class CQLCriticPallas:
    """Pallas-backed equivalent of CQLCritic.forward / forward_target / q1 / q_min."""

    def __init__(self, state_dim, action_dim, goal_dim, hidden_dim=256,
                 key=None, batch_tile=512):
        if key is None:
            key = jax.random.PRNGKey(0)
        k1, k2 = jax.random.split(key)
        p1 = init_qnet_params(k1, state_dim, action_dim, goal_dim, hidden_dim)
        p2 = init_qnet_params(k2, state_dim, action_dim, goal_dim, hidden_dim)
        self.params = _stack_params([p1, p2])             # (2, ...) leading net axis
        # NOTE: target nets start as exact copies of the online nets, so
        # forward_target == forward until a Polyak/target-update path is added.
        # TODO(synk): loss()/target_update()/normalizer are training-time host
        # logic outside the forward pass and are not implemented here.
        self.target_params = jax.tree_util.tree_map(lambda a: a, self.params)
        self.batch_tile = batch_tile

    def forward(self, state, action, goal):
        q = cql_qnets_forward(state, action, goal, self.params,
                              batch_tile=self.batch_tile)
        return q[0], q[1]

    def forward_target(self, state, action, goal):
        q = cql_qnets_forward(state, action, goal, self.target_params,
                              batch_tile=self.batch_tile)
        return q[0], q[1]

    def q1(self, state, action, goal):
        p = jax.tree_util.tree_map(lambda x: x[0:1], self.params)   # net 0 only
        q = cql_qnets_forward(state, action, goal, p,
                              batch_tile=self.batch_tile)
        return q[0]

    def q_min(self, state, action, goal):
        q1, q2 = self.forward(state, action, goal)
        return jnp.minimum(q1, q2)


# ------------------------------ reference --------------------------------------

def _qnet_ref(state, action, goal, params, n):
    """Pure-JAX f32 reference for net index n (exact mish, f32 matmuls)."""
    x = jnp.concatenate([state, action, goal], axis=-1).astype(jnp.float32)
    f32 = lambda k: params[k][n].astype(jnp.float32)

    def mish(v):
        return v * jnp.tanh(jax.nn.softplus(v))

    h = mish(x @ f32("w1") + f32("b1"))
    h = mish(h @ f32("w2") + f32("b2"))
    h = mish(h @ f32("w3") + f32("b3"))
    return h @ jnp.transpose(f32("w4r")) + f32("b4")


# --------------------------------- main -----------------------------------------

if __name__ == "__main__":
    state_dim, action_dim, goal_dim = 12, 4, 4
    hidden_dim = 256           # module default; lane-aligned (multiple of 128)
    batch = 203                # not a tile multiple -> exercises the ragged last block

    key = jax.random.PRNGKey(0)
    k_model, k_s, k_a, k_g = jax.random.split(key, 4)

    # batch_tile=128 here so the 203-row batch spans two batch tiles (multi-step
    # pipeline + ragged boundary both exercised); production default is 512.
    critic = CQLCriticPallas(state_dim, action_dim, goal_dim,
                             hidden_dim=hidden_dim, key=k_model, batch_tile=128)

    state = jax.random.normal(k_s, (batch, state_dim), jnp.float32)
    action = jax.random.normal(k_a, (batch, action_dim), jnp.float32)
    goal = jax.random.normal(k_g, (batch, goal_dim), jnp.float32)

    q1, q2 = critic.forward(state, action, goal)
    qmin = critic.q_min(state, action, goal)
    q1_only = critic.q1(state, action, goal)
    qt1, qt2 = critic.forward_target(state, action, goal)
    jax.block_until_ready((q1, q2, qmin, q1_only, qt1, qt2))

    # Sanity checks against the pure-JAX f32 reference (bf16 MXU operands + approx
    # EUP reciprocal in the kernel -> a few-permil relative error at most).
    q1_ref = _qnet_ref(state, action, goal, critic.params, 0)
    q2_ref = _qnet_ref(state, action, goal, critic.params, 1)

    assert q1.shape == (batch, 1) and q2.shape == (batch, 1)
    assert qmin.shape == (batch, 1) and q1_only.shape == (batch, 1)
    assert jnp.allclose(q1, q1_ref, atol=2e-2, rtol=2e-2)
    assert jnp.allclose(q2, q2_ref, atol=2e-2, rtol=2e-2)
    assert jnp.allclose(q1_only, q1, atol=1e-5, rtol=1e-5)
    assert jnp.allclose(qmin, jnp.minimum(q1, q2), atol=1e-6, rtol=1e-6)
    # target nets are copies of the online nets until a target-update path exists.
    assert jnp.allclose(qt1, q1, atol=1e-6, rtol=1e-6)
    assert jnp.allclose(qt2, q2, atol=1e-6, rtol=1e-6)

    print("KERNEL_OK")
</pallas_src>

<mosaic_0001>
module attributes {stable_mosaic.version = 11 : i64} {
  func.func @_cql_qnet_kernel(%arg0: i32, %arg1: i32, %arg2: memref<128x20xbf16, #tpu.memory_space<vmem>>, %arg3: memref<1x20x256xbf16, #tpu.memory_space<vmem>>, %arg4: memref<1x1x256xf32, #tpu.memory_space<vmem>>, %arg5: memref<1x256x256xbf16, #tpu.memory_space<vmem>>, %arg6: memref<1x1x256xf32, #tpu.memory_space<vmem>>, %arg7: memref<1x256x256xbf16, #tpu.memory_space<vmem>>, %arg8: memref<1x1x256xf32, #tpu.memory_space<vmem>>, %arg9: memref<1x1x256xf32, #tpu.memory_space<vmem>>, %arg10: memref<1x1x1xf32, #tpu.memory_space<vmem>>, %arg11: memref<1x128x1xf32, #tpu.memory_space<vmem>>) attributes {dimension_semantics = [#tpu.dimension_semantics<parallel>, #tpu.dimension_semantics<parallel>], iteration_bounds = array<i64: 2, 2>, scalar_prefetch = 0 : i64, scratch_operands = 0 : i64, tpu.core_type = #tpu.core_type<tc>, window_params = [{transform_indices = @transform_0, window_bounds = array<i64: 128, 20>}, {transform_indices = @transform_1, window_bounds = array<i64: 1, 20, 256>}, {transform_indices = @transform_2, window_bounds = array<i64: 1, 1, 256>}, {transform_indices = @transform_3, window_bounds = array<i64: 1, 256, 256>}, {transform_indices = @transform_4, window_bounds = array<i64: 1, 1, 256>}, {transform_indices = @transform_5, window_bounds = array<i64: 1, 256, 256>}, {transform_indices = @transform_6, window_bounds = array<i64: 1, 1, 256>}, {transform_indices = @transform_7, window_bounds = array<i64: 1, 1, 256>}, {transform_indices = @transform_8, window_bounds = array<i64: 1, 1, 1>}, {transform_indices = @transform_9, window_bounds = array<i64: 1, 128, 1>}]} {
    %c0 = arith.constant 0 : index
    %c0_0 = arith.constant 0 : index
    %0 = vector.load %arg2[%c0, %c0_0] : memref<128x20xbf16, #tpu.memory_space<vmem>>, vector<128x20xbf16>
    %c0_1 = arith.constant 0 : index
    %c0_2 = arith.constant 0 : index
    %c0_3 = arith.constant 0 : index
    %1 = vector.load %arg3[%c0_1, %c0_2, %c0_3] : memref<1x20x256xbf16, #tpu.memory_space<vmem>>, vector<1x20x256xbf16>
    %2 = vector.shape_cast %1 : vector<1x20x256xbf16> to vector<20x256xbf16>
    %cst = arith.constant dense<0.000000e+00> : vector<128x256xf32>
    %3 = tpu.matmul %0, %2, %cst {dimension_numbers = #tpu.dot_dimension_numbers<[1], [0], [0], [1], [0, 0, 1, 1], [], []>} : vector<128x20xbf16>, vector<20x256xbf16>, vector<128x256xf32> -> vector<128x256xf32>
    %c0_4 = arith.constant 0 : index
    %c0_5 = arith.constant 0 : index
    %c0_6 = arith.constant 0 : index
    %4 = vector.load %arg4[%c0_4, %c0_5, %c0_6] : memref<1x1x256xf32, #tpu.memory_space<vmem>>, vector<1x1x256xf32>
    %5 = vector.shape_cast %4 : vector<1x1x256xf32> to vector<1x256xf32>
    %6 = vector.broadcast %5 : vector<1x256xf32> to vector<128x256xf32>
    %7 = arith.addf %3, %6 : vector<128x256xf32>
    %cst_7 = arith.constant 2.000000e+01 : f32
    %8 = vector.broadcast %cst_7 : f32 to vector<128x256xf32>
    %9 = arith.minimumf %7, %8 : vector<128x256xf32>
    %10 = math.exp %9 : vector<128x256xf32>
    %cst_8 = arith.constant 1.000000e+00 : f32
    %11 = vector.broadcast %cst_8 : f32 to vector<128x256xf32>
    %12 = arith.addf %11, %10 : vector<128x256xf32>
    %13 = arith.mulf %12, %12 : vector<128x256xf32>
    %cst_9 = arith.constant 1.000000e+00 : f32
    %14 = vector.broadcast %cst_9 : f32 to vector<128x256xf32>
    %15 = arith.subf %13, %14 : vector<128x256xf32>
    %cst_10 = arith.constant 1.000000e+00 : f32
    %16 = vector.broadcast %cst_10 : f32 to vector<128x256xf32>
    %17 = arith.addf %13, %16 : vector<128x256xf32>
    %18 = tpu.reciprocal %17 {approx = true} : vector<128x256xf32> -> vector<128x256xf32>
    %19 = arith.mulf %15, %18 : vector<128x256xf32>
    %20 = arith.mulf %7, %19 : vector<128x256xf32>
    %21 = arith.truncf %20 : vector<128x256xf32> to vector<128x256xbf16>
    %c0_11 = arith.constant 0 : index
    %c0_12 = arith.constant 0 : index
    %c0_13 = arith.constant 0 : index
    %22 = vector.load %arg5[%c0_11, %c0_12, %c0_13] : memref<1x256x256xbf16, #tpu.memory_space<vmem>>, vector<1x256x256xbf16>
    %23 = vector.shape_cast %22 : vector<1x256x256xbf16> to vector<256x256xbf16>
    %cst_14 = arith.constant dense<0.000000e+00> : vector<128x256xf32>
    %24 = tpu.matmul %21, %23, %cst_14 {dimension_numbers = #tpu.dot_dimension_numbers<[1], [0], [0], [1], [0, 0, 1, 1], [], []>} : vector<128x256xbf16>, vector<256x256xbf16>, vector<128x256xf32> -> vector<128x256xf32>
    %c0_15 = arith.constant 0 : index
    %c0_16 = arith.constant 0 : index
    %c0_17 = arith.constant 0 : index
    %25 = vector.load %arg6[%c0_15, %c0_16, %c0_17] : memref<1x1x256xf32, #tpu.memory_space<vmem>>, vector<1x1x256xf32>
    %26 = vector.shape_cast %25 : vector<1x1x256xf32> to vector<1x256xf32>
    %27 = vector.broadcast %26 : vector<1x256xf32> to vector<128x256xf32>
    %28 = arith.addf %24, %27 : vector<128x256xf32>
    %cst_18 = arith.constant 2.000000e+01 : f32
    %29 = vector.broadcast %cst_18 : f32 to vector<128x256xf32>
    %30 = arith.minimumf %28, %29 : vector<128x256xf32>
    %31 = math.exp %30 : vector<128x256xf32>
    %cst_19 = arith.constant 1.000000e+00 : f32
    %32 = vector.broadcast %cst_19 : f32 to vector<128x256xf32>
    %33 = arith.addf %32, %31 : vector<128x256xf32>
    %34 = arith.mulf %33, %33 : vector<128x256xf32>
    %cst_20 = arith.constant 1.000000e+00 : f32
    %35 = vector.broadcast %cst_20 : f32 to vector<128x256xf32>
    %36 = arith.subf %34, %35 : vector<128x256xf32>
    %cst_21 = arith.constant 1.000000e+00 : f32
    %37 = vector.broadcast %cst_21 : f32 to vector<128x256xf32>
    %38 = arith.addf %34, %37 : vector<128x256xf32>
    %39 = tpu.reciprocal %38 {approx = true} : vector<128x256xf32> -> vector<128x256xf32>
    %40 = arith.mulf %36, %39 : vector<128x256xf32>
    %41 = arith.mulf %28, %40 : vector<128x256xf32>
    %42 = arith.truncf %41 : vector<128x256xf32> to vector<128x256xbf16>
    %c0_22 = arith.constant 0 : index
    %c0_23 = arith.constant 0 : index
    %c0_24 = arith.constant 0 : index
    %43 = vector.load %arg7[%c0_22, %c0_23, %c0_24] : memref<1x256x256xbf16, #tpu.memory_space<vmem>>, vector<1x256x256xbf16>
    %44 = vector.shape_cast %43 : vector<1x256x256xbf16> to vector<256x256xbf16>
    %cst_25 = arith.constant dense<0.000000e+00> : vector<128x256xf32>
    %45 = tpu.matmul %42, %44, %cst_25 {dimension_numbers = #tpu.dot_dimension_numbers<[1], [0], [0], [1], [0, 0, 1, 1], [], []>} : vector<128x256xbf16>, vector<256x256xbf16>, vector<128x256xf32> -> vector<128x256xf32>
    %c0_26 = arith.constant 0 : index
    %c0_27 = arith.constant 0 : index
    %c0_28 = arith.constant 0 : index
    %46 = vector.load %arg8[%c0_26, %c0_27, %c0_28] : memref<1x1x256xf32, #tpu.memory_space<vmem>>, vector<1x1x256xf32>
    %47 = vector.shape_cast %46 : vector<1x1x256xf32> to vector<1x256xf32>
    %48 = vector.broadcast %47 : vector<1x256xf32> to vector<128x256xf32>
    %49 = arith.addf %45, %48 : vector<128x256xf32>
    %cst_29 = arith.constant 2.000000e+01 : f32
    %50 = vector.broadcast %cst_29 : f32 to vector<128x256xf32>
    %51 = arith.minimumf %49, %50 : vector<128x256xf32>
    %52 = math.exp %51 : vector<128x256xf32>
    %cst_30 = arith.constant 1.000000e+00 : f32
    %53 = vector.broadcast %cst_30 : f32 to vector<128x256xf32>
    %54 = arith.addf %53, %52 : vector<128x256xf32>
    %55 = arith.mulf %54, %54 : vector<128x256xf32>
    %cst_31 = arith.constant 1.000000e+00 : f32
    %56 = vector.broadcast %cst_31 : f32 to vector<128x256xf32>
    %57 = arith.subf %55, %56 : vector<128x256xf32>
    %cst_32 = arith.constant 1.000000e+00 : f32
    %58 = vector.broadcast %cst_32 : f32 to vector<128x256xf32>
    %59 = arith.addf %55, %58 : vector<128x256xf32>
    %60 = tpu.reciprocal %59 {approx = true} : vector<128x256xf32> -> vector<128x256xf32>
    %61 = arith.mulf %57, %60 : vector<128x256xf32>
    %62 = arith.mulf %49, %61 : vector<128x256xf32>
    %63 = arith.truncf %62 : vector<128x256xf32> to vector<128x256xbf16>
    %c0_33 = arith.constant 0 : index
    %c0_34 = arith.constant 0 : index
    %c0_35 = arith.constant 0 : index
    %64 = vector.load %arg9[%c0_33, %c0_34, %c0_35] : memref<1x1x256xf32, #tpu.memory_space<vmem>>, vector<1x1x256xf32>
    %65 = vector.shape_cast %64 : vector<1x1x256xf32> to vector<1x256xf32>
    %66 = arith.extf %63 : vector<128x256xbf16> to vector<128x256xf32>
    %67 = vector.broadcast %65 : vector<1x256xf32> to vector<128x256xf32>
    %68 = arith.mulf %66, %67 : vector<128x256xf32>
    %cst_36 = arith.constant dense<0.000000e+00> : vector<128xf32>
    %69 = vector.multi_reduction <add>, %68, %cst_36 [1] : vector<128x256xf32> to vector<128xf32>
    %70 = vector.shape_cast %69 : vector<128xf32> to vector<128x1xf32>
    %c0_37 = arith.constant 0 : index
    %c0_38 = arith.constant 0 : index
    %c0_39 = arith.constant 0 : index
    %71 = vector.load %arg10[%c0_37, %c0_38, %c0_39] : memref<1x1x1xf32, #tpu.memory_space<vmem>>, vector<1x1x1xf32>
    %72 = vector.shape_cast %71 : vector<1x1x1xf32> to vector<1x1xf32>
    %73 = vector.broadcast %72 : vector<1x1xf32> to vector<128x1xf32>
    %74 = arith.addf %70, %73 : vector<128x1xf32>
    %c0_40 = arith.constant 0 : index
    %c0_41 = arith.constant 0 : index
    %c0_42 = arith.constant 0 : index
    %75 = vector.load %arg11[%c0_40, %c0_41, %c0_42] : memref<1x128x1xf32, #tpu.memory_space<vmem>>, vector<1x128x1xf32>
    %76 = vector.shape_cast %75 : vector<1x128x1xf32> to vector<128x1xf32>
    %77 = vector.shape_cast %74 : vector<128x1xf32> to vector<1x128x1xf32>
    tpu.vector_store %arg11[%c0_40, %c0_41, %c0_42], %77 {strides = array<i32>} : memref<1x128x1xf32, #tpu.memory_space<vmem>>, vector<1x128x1xf32>,
    return
  }
  func.func @transform_0(%arg0: i32, %arg1: i32) -> (i32, i32) {
    %c0_i32 = arith.constant 0 : i32
    %c0_i32_0 = arith.constant 0 : i32
    return %arg1, %c0_i32 : i32, i32
  }
  func.func @transform_1(%arg0: i32, %arg1: i32) -> (i32, i32, i32) {
    %c0_i32 = arith.constant 0 : i32
    %c0_i32_0 = arith.constant 0 : i32
    %c0_i32_1 = arith.constant 0 : i32
    return %arg0, %c0_i32, %c0_i32_0 : i32, i32, i32
  }
  func.func @transform_2(%arg0: i32, %arg1: i32) -> (i32, i32, i32) {
    %c0_i32 = arith.constant 0 : i32
    %c0_i32_0 = arith.constant 0 : i32
    %c0_i32_1 = arith.constant 0 : i32
    return %arg0, %c0_i32, %c0_i32_0 : i32, i32, i32
  }
  func.func @transform_3(%arg0: i32, %arg1: i32) -> (i32, i32, i32) {
    %c0_i32 = arith.constant 0 : i32
    %c0_i32_0 = arith.constant 0 : i32
    %c0_i32_1 = arith.constant 0 : i32
    return %arg0, %c0_i32, %c0_i32_0 : i32, i32, i32
  }
  func.func @transform_4(%arg0: i32, %arg1: i32) -> (i32, i32, i32) {
    %c0_i32 = arith.constant 0 : i32
    %c0_i32_0 = arith.constant 0 : i32
    %c0_i32_1 = arith.constant 0 : i32
    return %arg0, %c0_i32, %c0_i32_0 : i32, i32, i32
  }
  func.func @transform_5(%arg0: i32, %arg1: i32) -> (i32, i32, i32) {
    %c0_i32 = arith.constant 0 : i32
    %c0_i32_0 = arith.constant 0 : i32
    %c0_i32_1 = arith.constant 0 : i32
    return %arg0, %c0_i32, %c0_i32_0 : i32, i32, i32
  }
  func.func @transform_6(%arg0: i32, %arg1: i32) -> (i32, i32, i32) {
    %c0_i32 = arith.constant 0 : i32
    %c0_i32_0 = arith.constant 0 : i32
    %c0_i32_1 = arith.constant 0 : i32
    return %arg0, %c0_i32, %c0_i32_0 : i32, i32, i32
  }
  func.func @transform_7(%arg0: i32, %arg1: i32) -> (i32, i32, i32) {
    %c0_i32 = arith.constant 0 : i32
    %c0_i32_0 = arith.constant 0 : i32
    %c0_i32_1 = arith.constant 0 : i32
    return %arg0, %c0_i32, %c0_i32_0 : i32, i32, i32
  }
  func.func @transform_8(%arg0: i32, %arg1: i32) -> (i32, i32, i32) {
    %c0_i32 = arith.constant 0 : i32
    %c0_i32_0 = arith.constant 0 : i32
    %c0_i32_1 = arith.constant 0 : i32
    return %arg0, %c0_i32, %c0_i32_0 : i32, i32, i32
  }
  func.func @transform_9(%arg0: i32, %arg1: i32) -> (i32, i32, i32) {
    %c0_i32 = arith.constant 0 : i32
    %c0_i32_0 = arith.constant 0 : i32
    return %arg0, %arg1, %c0_i32 : i32, i32, i32
  }
}

</mosaic_0001>

<bundles_post_ra>
// kernel: tpu_custom_call.1
= control target key start
LH: loop header
LB: loop body
LE: loop exit
PB: predicated region body
PF: predicated region fallthrough
CT: control target
= control target key end

     0   :  { %s5452_s0 = inlined_call_operand.vmem [shape: bf16[203,20], index: 0, kind: input, shape index: {}]   ;;  %s5453_s1 = inlined_call_operand.vmem [shape: bf16[2,20,256], index: 1, kind: input, shape index: {}]   ;;  %s5454_s2 = inlined_call_operand.vmem [shape: f32[2,1,256], index: 2, kind: input, shape index: {}]   ;;  %s5455_s3 = inlined_call_operand.hbm [shape: bf16[2,256,256], index: 3, kind: input, shape index: {}]   ;;  %s5456_s4 = inlined_call_operand.vmem [shape: f32[2,1,256], index: 4, kind: input, shape index: {}]   ;;  %s5457_s5 = inlined_call_operand.hbm [shape: bf16[2,256,256], index: 5, kind: input, shape index: {}]   ;;  %s5458_s6 = inlined_call_operand.vmem [shape: f32[2,1,256], index: 6, kind: input, shape index: {}]   ;;  %s5459_s7 = inlined_call_operand.vmem [shape: f32[2,1,256], index: 7, kind: input, shape index: {}]   ;;  %s5460_s8 = inlined_call_operand.vmem [shape: f32[2,1,1], index: 8, kind: input, shape index: {}]   ;;  %s5461_s9 = inlined_call_operand.vmem [shape: f32[2,203,1], index: 9, kind: output, shape index: {}]  }
   0x1   :  { %5479 = sst [smem:[#allocation25_spill]] %s5455_s3 }
   0x2   :  { %5480 = sst [smem:[#allocation26_spill]] %s5460_s8 }
   0x3   :  { %5481 = sst [smem:[#allocation27_spill]] %s5461_s9 }
   0x4   :  { %14 = vsyncpa [#allocation3], 0 }
   0x5   :  { %16 = vsyncpa [#allocation3 + $0x1], 0 }
   0x6   :  { %17 = vsyncpa [#allocation5], 0 }
   0x7   :  { %19 = vsyncpa [#allocation5 + $0x1], 0  ;;  %s4136_s30 = smov 0   ;;  %s4138_s10 = smov 0  }
   0x8   :  { %s4140_s11 = smov 0   ;;  %s4142_s12 = smov 0  }
   0x9   :  { %s4144_s13 = smov 0   ;;  %s4146_s14 = smov 0  }
   0xa   :  { %s4148_s15 = smov 0   ;;  %s4150_s16 = smov 0  }
   0xb   :  { %s4152_s17 = smov 0   ;;  %s4154_s18 = smov 0  }
   0xc LB: > { %5482 = sst [smem:[#allocation9_spill]] %s4015_s10  ;;  %s2995_s19 = sadd.s32 4294967295, %s4047_s18   ;;  %s4047_s18 = sphi %s4154_s18, %s25_s18   ;;  %s4043_s17 = sphi %s4152_s17, %s5530_s17   ;;  %s4039_s16 = sphi %s4150_s16, %s5525_s16   ;;  %s4035_s15 = sphi %s4148_s15, %s5529_s15   ;;  %s4031_s14 = sphi %s4146_s14, %s5524_s14   ;;  %s4027_s13 = sphi %s4144_s13, %s5523_s13   ;;  %s4023_s12 = sphi %s4142_s12, %s5528_s12   ;;  %s4019_s11 = sphi %s4140_s11, %s5527_s11   ;;  %s4015_s10 = sphi %s4138_s10, %s5521_s10   ;;  %s4011_s30 = sphi %s4136_s30, %s5520_s30  }
   0xd   : > { %5483 = sst [smem:[#allocation10_spill]] %s4027_s13  ;;  %s34_s20 = sadd.s32 1, %s4039_s16 }
   0xe   : > { %5484 = sst [smem:[#allocation11_spill]] %s4039_s16  ;;  %p35_p0 = scmp.ge.s32.totalorder %s34_s20, 2 }
   0xf   : > { %s37_s21 = sadd.s32 1, %s4043_s17  ;;  %s122_s22 = sadd.s32 1, %s4027_s13 }
  0x10   : > { %p129_p1 = scmp.ne.s32.totalorder %s4027_s13, %s4023_s12  ;;  %s5532_s20 = smov (%p35_p0, %s34_s20), 0 }
  0x11   : > { %5485 = sst [smem:[#allocation12_spill]] %s5532_s20  ;;  %s5534_s21 = smov (!%p35_p0, %s37_s21), %s4043_s17 }
  0x12   : > { %p130_p2 = scmp.eq.s32.totalorder %s4047_s18, 0  ;;  %p135_p3 = scmp.ne.s32.totalorder %s4023_s12, %s4019_s11 }
  0x13   : > { %p39_p4 = scmp.ge.s32.totalorder %s5534_s21, 2  ;;  %p136_p5 = scmp.eq.s32.totalorder %s2995_s19, 0 }
  0x14   : > { %p4195_p6 = por %p130_p2, %p129_p1  ;;  %s276_s24 = ssub.s32 %s4039_s16, %s5532_s20 }
  0x15   : > { %s5536_s21 = smov (%p39_p4, %s5534_s21), 0  ;;  %p4203_p7 = por %p136_p5, %p135_p3 }
  0x16   : > { %5487 = sst [smem:[#allocation13_spill]] %s5536_s21  ;;  %s280_s26 = sadd.s32 1, %s4015_s10 }
  0x17   : > { %s119_s27 = ssub.s32 %s4043_s17, %s5536_s21  ;;  %p290_p8 = scmp.ne.s32.totalorder %s4015_s10, %s4011_s30 }
  0x18   : > { %p120_p9 = scmp.eq.s32.totalorder %s119_s27, 0  ;;  %s277_s28 = sor.u32 %s276_s24, %s119_s27 }
  0x19   : > { %p278_p10 = scmp.eq.s32.totalorder %s277_s28, 0  ;;  %p291_p11 = scmp.eq.s32.totalorder %s2995_s19, 3 }
  0x1a   : > { %s4213_s29 = scalar_select %p120_p9, %s4027_s13, %s122_s22  }
  0x1b   : > { %s4216_s11 = scalar_select %p278_p10, %s4015_s10, %s280_s26  }
  0x1c   : > { %5489 = sst [smem:[#allocation14_spill]] %s4213_s29  ;;  %p4218_p12 = por %p291_p11, %p290_p8 }
  0x1d   : > { %5490 = sst [smem:[#allocation15_spill]] %s4216_s11  ;;  %p3232_p13 = scmp.lt.s32.totalorder %s4047_s18, 4 }
  0x1e   : > { %s5491_s20 = scalar_select %p4218_p12, 1, 0 }
  0x1f   : > { %s4224_s16 = sand.u32 1, %s4027_s13   ;;  %s3215_s9 = sshll.u32 %s4043_s17, 12 }
  0x20   : > { %5492 = sst [smem:[#allocation16_spill]] %s5491_s20  ;;  %s5466_s21 = sshll.u32 %s4224_s16, 8 }
  0x21   : > { %s5493_s3 = sld [smem:[#allocation25_spill]]  ;;  %s353_s22 = scalar_lea.vmem [#allocation2], %s5466_s21 }
  0x22   : > { %s360_s26 = sshll.u32 %s353_s22, 4  ;;  %p4237_p0 = pnand %p3232_p13, %p4195_p6  ;;  %s361_s26 = int_to_ptr.vmem [resolvable:$true] %s360_s26 }
  0x23   : > { %p3005_p1 = scmp.ge.s32.totalorder %s4047_s18, 1  ;;  %s350_s29 = scalar_lea.sflag [#allocation3], %s4224_s16 }
  0x24   : > { %p3875_p2 = pneg %p4237_p0  ;;  %s3886_s13 = scalar_lea.vmem %s361_s26, 4096 }
  0x25   : > { %p3887_p3 = scmp.ne.s32.totalorder %s361_s26, %s3886_s13  ;;  %s4081_s24 = smov [#allocation2]  }
  0x26   : > { %s3891_s27 = sshll.u32 %s4081_s24, 4  ;;  %s3892_s27 = int_to_ptr.vmem [resolvable:$false] %s3891_s27 }
  0x27   : > { %s359_s19 = scalar_lea.hbm %s5493_s3, %s3215_s9  ;;  %p3889_p4 = pnand %p3887_p3, %p3875_p2 }
  0x28   : > { %s3893_s23 = scalar_lea.vmem %s3892_s27, 8192  ;;  %p3894_p6 = scmp.lt.s32.totalorder %s361_s26, %s3892_s27 }
  0x29   : > { %p3890_p5 = pneg %p3889_p4  ;;  %p3895_p8 = scmp.lt.s32.totalorder %s3893_s23, %s3886_s13 }
  0x2b   : > { %p3896_p9 = por %p3895_p8, %p3894_p6 }
  0x2d   : > { %p3897_p10 = pnand %p3896_p9, %p3890_p5 }
  0x2f   : > { %3900 = shalt.err (!%p3897_p10)
}
  0x30   : > { %s4082_s22 = smov 128   ;;  %s4083_s21 = smov 8  }
  0x31   : > { %3228 = dma.hbm_to_vmem [thread:$0]  (!%p4237_p0), %s359_s19, 4096, %s361_s26, %s350_s29, %s4082_s22, %s4082_s22, %s4083_s21  }
  0x32   : > { %p416_p11 = scmp.lt.s32.totalorder %s4047_s18, 5  ;;  %s387_s13 = scalar_lea.hbm %s5457_s5, %s3215_s9 }
  0x33   : > { %s5496_s23 = sshll.u32 %s4224_s16, 8  ;;  %s378_s20 = scalar_lea.sflag [#allocation5], %s4224_s16 }
  0x34   : > { %p4258_p13 = pnand %p3005_p1, %p416_p11  ;;  %s381_s11 = scalar_lea.vmem [#allocation4], %s5496_s23 }
  0x35   : > { %s388_s10 = sshll.u32 %s381_s11, 4  ;;  %s4084_s29 = smov [#allocation4]   ;;  %s389_s10 = int_to_ptr.vmem [resolvable:$true] %s388_s10 }
  0x36   : > { %s3914_s8 = scalar_lea.vmem %s389_s10, 4096  ;;  %s3919_s19 = sshll.u32 %s4084_s29, 4  ;;  %s3920_s19 = int_to_ptr.vmem [resolvable:$false] %s3919_s19 }
  0x37   : > { %p3915_p3 = scmp.ne.s32.totalorder %s389_s10, %s3914_s8  ;;  %s3921_s3 = scalar_lea.vmem %s3920_s19, 8192 }
  0x38   : > { %p3922_p6 = scmp.lt.s32.totalorder %s389_s10, %s3920_s19  ;;  %p3923_p1 = scmp.lt.s32.totalorder %s3921_s3, %s3914_s8 }
  0x39   : > { %p3917_p4 = pnand %p3915_p3, %p3875_p2 }
  0x3a   : > { %p3924_p8 = por %p3923_p1, %p3922_p6 }
  0x3b   : > { %p3918_p5 = pneg %p3917_p4 }
  0x3d   : > { %p3925_p9 = pnand %p3924_p8, %p3918_p5 }
  0x3f   : > { %3928 = shalt.err (!%p3925_p9)
}
  0x40   : > { %3231 = dma.hbm_to_vmem [thread:$0]  (!%p4237_p0), %s387_s13, 4096, %s389_s10, %s378_s20, %s4082_s22, %s4082_s22, %s4083_s21  }
  0x41   : > { %420 = sbr.rel (%p4258_p13) target bundleno = 1134 (0x46e), region = 56 }
  0x46   : > { %s422_s9 = sand.u32 1, %s4023_s12  }
  0x47   : > { %s3006_s16 = sshll.u32 %s422_s9, 8  ;;  %s423_s11 = scalar_lea.sflag [#allocation3], %s422_s9 }
  0x48   : > { %s4273_s26 = scalar_lea.vmem [#allocation2], %s3006_s16 }
  0x49   : > { %4002 = dma.done.wait (%p4203_p7), %s423_s11, 4096  }
  0x4a   : > { %4004 = vsyncadd (%p4203_p7), %s423_s11, 4294963200  ;;  %s432_s8 = scalar_lea.sflag [#allocation5], %s422_s9  ;;  %s4279_s24 = scalar_lea.vmem [#allocation4], %s3006_s16 }
  0x4b   : > { %4006 = dma.done.wait (%p4203_p7), %s432_s8, 4096  }
  0x4c   : > { %4008 = vsyncadd (%p4203_p7), %s432_s8, 4294963200  ;;  %p521_p0 = scmp.lt.s32.totalorder %s4035_s15, 1  ;;  %s4287_s10 = sshll.u32 %s4031_s14, 4  ;;  %v4085_v0 = vmov 0   ;;  %vm662_vm0 = vcmask 1041408   ;;  %vm637_vm1 = vcmask 162816   ;;  %v572_v47 = vlaneseq }
  0x4d   : > { %701 = vmatprep.mubr.bf16.mxu0 %v4085_v0  ;;  %p512_p2 = scmp.lt.s32.totalorder %s4287_s10, 25  ;;  %v3393_v8 = vld [vmem:[%s4273_s26 + $0x74] ss:$8 sps:$4 sm:$0xff]   ;;  %v3395_v9 = vld [vmem:[%s4273_s26 + $0x70] ss:$8 sps:$4 sm:$0xff]   ;;  %vm2571_vm2 = vcmask 7168  }
  0x4e   : > { %s4291_s20 = scalar_select %p521_p0, %s4035_s15, 1  ;;  %1322 = vmatprep.subr.bf16.mxu1 %v3393_v8  ;;  %v3396_v10 = vld [vmem:[%s4273_s26 + $0x64] ss:$8 sps:$4 sm:$0xff]   ;;  %v3398_v12 = vld [vmem:[%s4273_s26 + $0x60] ss:$8 sps:$4 sm:$0xff]   ;;  %v573_v48 = vshrl.u32 %v572_v47, 7 }
  0x4f   : > { %s513_s21 = scalar_select %p512_p2, %s4287_s10, 25  ;;  %1323 = vmatpush1.bf16.msra.mxu1 %v3395_v9  ;;  %v3399_v13 = vld [vmem:[%s4273_s26 + $0x54] ss:$8 sps:$4 sm:$0xff]   ;;  %v3401_v14 = vld [vmem:[%s4273_s26 + $0x50] ss:$8 sps:$4 sm:$0xff]  }
  0x50   : > { %s3219_s28 = smul.u32 24, %s4291_s20  ;;  %1324 = vmatprep.subr.bf16.mxu1 %v3396_v10  ;;  %v3402_v21 = vld [vmem:[%s4273_s26 + $0x44] ss:$8 sps:$4 sm:$0xff]   ;;  %v3404_v22 = vld [vmem:[%s4273_s26 + $0x40] ss:$8 sps:$4 sm:$0xff]   ;;  %s4352_s19 = sshll.u32 %s4291_s20, 1 }
  0x51   : > { %s3010_s22 = sshll.u32 %s513_s21, 2  ;;  %v3405_v23 = vld [vmem:[%s4273_s26 + $0x34] ss:$8 sps:$4 sm:$0xff]   ;;  %v3407_v24 = vld [vmem:[%s4273_s26 + $0x30] ss:$8 sps:$4 sm:$0xff]   ;;  %s529_s16 = scalar_lea.vmem %s5454_s2, %s4352_s19  ;;  %v4358_v49 = vsub.s32 0, %v573_v48 }
  0x52   : > { %s525_s27 = scalar_lea.vmem %s5453_s1, %s3219_s28  ;;  %s4301_s29 = scalar_lea.vmem %s5452_s0, %s3010_s22  ;;  %v3408_v25 = vld [vmem:[%s4273_s26 + $0x24] ss:$8 sps:$4 sm:$0xff]   ;;  %v3410_v26 = vld [vmem:[%s4273_s26 + $0x20] ss:$8 sps:$4 sm:$0xff]   ;;  %v3411_v27 = vld [vmem:[%s4273_s26 + $0x14] ss:$8 sps:$4 sm:$0xff]  }
  0x53   : > { %v569_v1 = vld [vmem:[%s525_s27 + $0x10] sm:$0x33]  ;;  %v3382_v4 = vld [vmem:[%s525_s27 + $0x4] ss:$8 sps:$4 sm:$0xff]   ;;  %v3384_v6 = vld [vmem:[%s525_s27] ss:$8 sps:$4 sm:$0xff]   ;;  %1325 = vmatpush1.bf16.msra.mxu1 %v3398_v12  ;;  %s533_s8 = scalar_lea.vmem %s5456_s4, %s4352_s19  ;;  %s537_s28 = scalar_lea.vmem %s5458_s6, %s4352_s19 }
  0x54   : > { %v3027_v2 = vcombine.high %v569_v1, %v569_v1  ;;  %v3026_v3 = vcombine.low %v569_v1, %v569_v1  ;;  %v3385_v7 = vld [vmem:[%s4301_s29] sm:$0xff]   ;;  %v3386_v11 = vld [vmem:[%s4301_s29 + $0x8] sm:$0xff]   ;;  %1326 = vmatprep.subr.bf16.mxu1 %v3399_v13  ;;  %v3387_v15 = vld [vmem:[%s4301_s29 + $0x10] sm:$0xff]   ;;  %5497 = vst [vmem:[#allocation17_spill] sm:$0xff] %v4358_v49  ;;  %v4363_v52 = vsub.s32 1, %v573_v48  ;;  %s541_s25 = scalar_lea.vmem %s5459_s7, %s4352_s19  ;;  %s504_s27 = sand.u32 1, %s4011_s30  }
  0x55   : > { %v3388_v16 = vld [vmem:[%s4301_s29 + $0x18] sm:$0xff]   ;;  %v3389_v17 = vld [vmem:[%s4301_s29 + $0x20] sm:$0xff]   ;;  %v3390_v18 = vld [vmem:[%s4301_s29 + $0x28] sm:$0xff]   ;;  %s3008_s3 = sshll.u32 %s504_s27, 7 }
  0x56   : > { %3028 = vmatprep.subr.msk.bf16.mxu0 %vm662_vm0, %v3027_v2  ;;  %v664_v5 = vsel %vm662_vm0, %v3026_v3, 0  ;;  %v3391_v19 = vld [vmem:[%s4301_s29 + $0x30] sm:$0xff]   ;;  %v3392_v20 = vld [vmem:[%s4301_s29 + $0x38] sm:$0xff]   ;;  %v3414_v29 = vld [vmem:[%s4273_s26 + $0x4] ss:$8 sps:$4 sm:$0xff]   ;;  %5498 = vst [vmem:[#allocation18_spill] sm:$0xff] %v4363_v52 }
  0x57   : > { %682 = vmatpush1.bf16.msra.mxu0 %v664_v5  ;;  %1327 = vmatpush1.bf16.msra.mxu1 %v3401_v14  ;;  %v3413_v28 = vld [vmem:[%s4273_s26 + $0x10] ss:$8 sps:$4 sm:$0xff]   ;;  %v3416_v30 = vld [vmem:[%s4273_s26] ss:$8 sps:$4 sm:$0xff]   ;;  %v3417_v31 = vld [vmem:[%s4273_s26 + $0xf4] ss:$8 sps:$4 sm:$0xff]  }
  0x58   : > { %683 = vmatprep.subr.bf16.mxu0 %v3382_v4  ;;  %1328 = vmatprep.subr.bf16.mxu1 %v3402_v21  ;;  %v3419_v32 = vld [vmem:[%s4273_s26 + $0xf0] ss:$8 sps:$4 sm:$0xff]   ;;  %v3420_v33 = vld [vmem:[%s4273_s26 + $0xe4] ss:$8 sps:$4 sm:$0xff]   ;;  %v3422_v34 = vld [vmem:[%s4273_s26 + $0xe0] ss:$8 sps:$4 sm:$0xff]  }
  0x59   : > { %v3423_v35 = vld [vmem:[%s4273_s26 + $0xd4] ss:$8 sps:$4 sm:$0xff]   ;;  %v3425_v36 = vld [vmem:[%s4273_s26 + $0xd0] ss:$8 sps:$4 sm:$0xff]   ;;  %v3426_v37 = vld [vmem:[%s4273_s26 + $0xc4] ss:$8 sps:$4 sm:$0xff]  }
  0x5a   : > { %v3428_v38 = vld [vmem:[%s4273_s26 + $0xc0] ss:$8 sps:$4 sm:$0xff]   ;;  %v3429_v39 = vld [vmem:[%s4273_s26 + $0xb4] ss:$8 sps:$4 sm:$0xff]   ;;  %v3431_v40 = vld [vmem:[%s4273_s26 + $0xb0] ss:$8 sps:$4 sm:$0xff]  }
  0x5b   : > { %684 = vmatpush1.bf16.msra.mxu0 %v3384_v6  ;;  %1329 = vmatpush1.bf16.msra.mxu1 %v3404_v22  ;;  %v3432_v41 = vld [vmem:[%s4273_s26 + $0xa4] ss:$8 sps:$4 sm:$0xff]   ;;  %v3434_v42 = vld [vmem:[%s4273_s26 + $0xa0] ss:$8 sps:$4 sm:$0xff]   ;;  %v3435_v43 = vld [vmem:[%s4273_s26 + $0x94] ss:$8 sps:$4 sm:$0xff]  }
  0x5c   : > { %1330 = vmatprep.subr.bf16.mxu1 %v3405_v23  ;;  %v3437_v44 = vld [vmem:[%s4273_s26 + $0x90] ss:$8 sps:$4 sm:$0xff]   ;;  %v3438_v45 = vld [vmem:[%s4273_s26 + $0x84] ss:$8 sps:$4 sm:$0xff]   ;;  %v3440_v46 = vld [vmem:[%s4273_s26 + $0x80] ss:$8 sps:$4 sm:$0xff]  }
  0x5d   : > { %v570_v50 = vld [vmem:[%s529_s16] sm:$0x3]  ;;  %v3441_v1 = vld [vmem:[%s4279_s24 + $0x70] ss:$8 sps:$4 sm:$0xff]   ;;  %v3443_v2 = vld [vmem:[%s4279_s24 + $0x74] ss:$8 sps:$4 sm:$0xff]  }
  0x5e   : > { %3029 = vmatmul.mubr.msk.bf16.vlgmr.msra.gmra.mxu0 %vm637_vm1, %v3385_v7  ;;  %v4361_v51 = vrot.slane %v570_v50, %v4358_v49  ;;  %v4369_v55 = vrot.slane %v570_v50, %v4363_v52  ;;  %v3446_v5 = vld [vmem:[%s4279_s24 + $0x64] ss:$8 sps:$4 sm:$0xff]   ;;  %1975 = vmatprep.subr.bf16.mxu0 %v3443_v2  ;;  %v3449_v13 = vld [vmem:[%s4279_s24 + $0x54] ss:$8 sps:$4 sm:$0xff]   ;;  %v3447_v21 = vld [vmem:[%s4279_s24 + $0x50] ss:$8 sps:$4 sm:$0xff]  }
  0x5f   : > { %711 = vmatprep.mubr.bf16.mxu0 %v4085_v0  ;;  %1331 = vmatpush1.bf16.msra.mxu1 %v3407_v24  ;;  %s5514_s29 = sld [smem:[#allocation26_spill]]  ;;  %s5297_s9 = scalar_lea.vmem [#allocation6], %s3008_s3  }
  0x60   : > { %1332 = vmatprep.subr.bf16.mxu1 %v3408_v25  ;;  %1976 = vmatpush1.bf16.msra.mxu0 %v3441_v1  ;;  %s3220_s16 = smul.u32 (%p4218_p12), 26, %s4035_s15 }
  0x61   : > { %1977 = vmatprep.subr.bf16.mxu0 %v3446_v5 }
  0x62   : > { %s2602_s11 = sadd.s32 (%p4218_p12), %s3220_s16, %s4287_s10 }
  0x63   : > { %1333 = vmatpush1.bf16.msra.mxu1 %v3410_v26  ;;  %s3202_s26 = sshll.u32 (%p4218_p12), %s2602_s11, 3 }
  0x64   : > { %1334 = vmatprep.subr.bf16.mxu1 %v3411_v27 }
  0x65   : > { %s544_s19 = scalar_lea.vmem %s5514_s29, %s4291_s20  ;;  %s2596_s20 = ssub.s32 (%p4218_p12), 26, %s4287_s10 }
  0x66   : > { %3030 = vmatmul.mubr.msk.bf16.gmra.mxu0 %vm637_vm1, %v3386_v11  ;;  %v3444_v11 = vld [vmem:[%s4279_s24 + $0x60] ss:$8 sps:$4 sm:$0xff]   ;;  %p2597_p7 = scmp.lt.s32.totalorder (%p4218_p12), %s2596_s20, 16 }
  0x67   : > { %721 = vmatprep.mubr.bf16.mxu0 %v4085_v0  ;;  %1335 = vmatpush1.bf16.msra.mxu1 %v3413_v28 }
  0x68   : > { %1336 = vmatprep.subr.bf16.mxu1 %v3414_v29  ;;  %1978 = vmatpush1.bf16.msra.mxu0 %v3444_v11 }
  0x69   : > { %1979 = vmatprep.subr.bf16.mxu0 %v3449_v13 }
  0x6b   : > { %1337 = vmatpush1.bf16.msra.mxu1 %v3416_v30 }
  0x6c   : > { %1338 = vmatprep.subr.bf16.mxu1 %v3417_v31  ;;  %1980 = vmatpush1.bf16.msra.mxu0 %v3447_v21 }
  0x6e   : > { %3031 = vmatmul.mubr.msk.bf16.gmra.mxu0 %vm637_vm1, %v3387_v15 }
  0x6f   : > { %731 = vmatprep.mubr.bf16.mxu0 %v4085_v0  ;;  %1339 = vmatpush2.bf16.msra.mxu1 %v3419_v32 }
  0x70   : > { %1340 = vmatprep.subr.bf16.mxu1 %v3420_v33 }
  0x73   : > { %1341 = vmatpush2.bf16.msra.mxu1 %v3422_v34 }
  0x74   : > { %1342 = vmatprep.subr.bf16.mxu1 %v3423_v35 }
  0x76   : > { %3032 = vmatmul.mubr.msk.bf16.gmra.mxu0 %vm637_vm1, %v3388_v16 }
  0x77   : > { %741 = vmatprep.mubr.bf16.mxu0 %v4085_v0  ;;  %1343 = vmatpush2.bf16.msra.mxu1 %v3425_v36 }
  0x78   : > { %1344 = vmatprep.subr.bf16.mxu1 %v3426_v37 }
  0x7b   : > { %1345 = vmatpush2.bf16.msra.mxu1 %v3428_v38 }
  0x7c   : > { %1346 = vmatprep.subr.bf16.mxu1 %v3429_v39 }
  0x7e   : > { %3033 = vmatmul.mubr.msk.bf16.gmra.mxu0 %vm637_vm1, %v3389_v17 }
  0x7f   : > { %751 = vmatprep.mubr.bf16.mxu0 %v4085_v0  ;;  %1347 = vmatpush2.bf16.msra.mxu1 %v3431_v40 }
  0x80   : > { %1348 = vmatprep.subr.bf16.mxu1 %v3432_v41 }
  0x83   : > { %1349 = vmatpush2.bf16.msra.mxu1 %v3434_v42 }
  0x84   : > { %1350 = vmatprep.subr.bf16.mxu1 %v3435_v43 }
  0x86   : > { %3034 = vmatmul.mubr.msk.bf16.gmra.mxu0 %vm637_vm1, %v3390_v18 }
  0x87   : > { %761 = vmatprep.mubr.bf16.mxu0 %v4085_v0  ;;  %1351 = vmatpush2.bf16.msra.mxu1 %v3437_v44 }
  0x88   : > { %1352 = vmatprep.subr.bf16.mxu1 %v3438_v45 }
  0x8b   : > { %1353 = vmatpush2.bf16.msra.mxu1 %v3440_v46 }
  0x8e   : > { %3035 = vmatmul.mubr.msk.bf16.gmra.mxu0 %vm637_vm1, %v3391_v19 }
  0x8f   : > { %771 = vmatprep.mubr.bf16.mxu0 %v4085_v0 }
  0x96   : > { %3036 = vmatmul.mubr.msk.bf16.gmra.mxu0 %vm637_vm1, %v3392_v20 }
 0x11e   : > { %v703_v53 = vpop.f32.mrf.mxu0 }
 0x11f   : > { %v4366_v54 = vadd.f32 %v703_v53, %v4361_v51 }
 0x120   : > { %v705_v56 = vpop.f32.mrf.mxu0 }
 0x121   : > { %v782_v57 = vmin.f32 %v4366_v54, 20.0  ;;  %v4376_v60 = vadd.f32 %v705_v56, %v4369_v55 }
 0x122   : > { %v707_v58 = vpop.f32.mrf.mxu0 }
 0x123   : > { %v4373_v59 = vadd.f32 %v707_v58, %v4361_v51  ;;  %v814_v62 = vmul.f32 1.442695, %v782_v57  ;;  %v783_v6 = vmin.f32 %v4376_v60, 20.0 }
 0x124   : > { %v709_v61 = vpop.f32.mrf.mxu0 }
 0x125   : > { %v784_v63 = vmin.f32 %v4373_v59, 20.0  ;;  %v4387_v7 = vadd.f32 %v709_v61, %v4369_v55  ;;  %3489 = vpow2.f32 %v814_v62  ;;  %v816_v16 = vmul.f32 1.442695, %v783_v6 }
 0x126   : > { %v713_v0 = vpop.f32.mrf.mxu0 }
 0x127   : > { %v818_v3 = vmul.f32 1.442695, %v784_v63  ;;  %v4382_v4 = vadd.f32 %v713_v0, %v4361_v51  ;;  %v785_v17 = vmin.f32 %v4387_v7, 20.0 }
 0x128   : > { %v715_v8 = vpop.f32.mrf.mxu0 }
 0x129   : > { %v786_v9 = vmin.f32 %v4382_v4, 20.0  ;;  %v4391_v10 = vadd.f32 %v715_v8, %v4369_v55  ;;  %3491 = vpow2.f32 %v818_v3  ;;  %v820_v26 = vmul.f32 1.442695, %v785_v17 }
 0x12a   : > { %v717_v12 = vpop.f32.mrf.mxu0 }
 0x12b   : > { %v822_v14 = vmul.f32 1.442695, %v786_v9  ;;  %v787_v15 = vmin.f32 %v4391_v10, 20.0  ;;  %v4402_v22 = vadd.f32 %v717_v12, %v4361_v51 }
 0x12c   : > { %v719_v18 = vpop.f32.mrf.mxu0 }
 0x12d   : > { %v824_v19 = vmul.f32 1.442695, %v787_v15  ;;  %v4398_v20 = vadd.f32 %v719_v18, %v4369_v55  ;;  %3493 = vpow2.f32 %v822_v14  ;;  %v788_v30 = vmin.f32 %v4402_v22, 20.0 }
 0x12e   : > { %v723_v23 = vpop.f32.mrf.mxu0  ;;  %3495 = vpow2.f32 %v816_v16 }
 0x12f   : > { %v789_v24 = vmin.f32 %v4398_v20, 20.0  ;;  %v4406_v25 = vadd.f32 %v723_v23, %v4361_v51  ;;  %3497 = vpow2.f32 %v824_v19  ;;  %v826_v37 = vmul.f32 1.442695, %v788_v30 }
 0x130   : > { %v725_v27 = vpop.f32.mrf.mxu0  ;;  %3499 = vpow2.f32 %v820_v26 }
 0x131   : > { %v828_v28 = vmul.f32 1.442695, %v789_v24  ;;  %v4409_v29 = vadd.f32 %v725_v27, %v4369_v55  ;;  %v790_v32 = vmin.f32 %v4406_v25, 20.0 }
 0x132   : > { %v727_v31 = vpop.f32.mrf.mxu0  ;;  %v3490_v36 = vpop.eup %3489 }
 0x133   : > { %v4414_v33 = vadd.f32 %v727_v31, %v4361_v51  ;;  %3501 = vpow2.f32 %v828_v28  ;;  %v791_v35 = vmin.f32 %v4409_v29, 20.0  ;;  %v830_v41 = vmul.f32 1.442695, %v790_v32 }
 0x134   : > { %v729_v34 = vpop.f32.mrf.mxu0  ;;  %v878_v46 = vadd.f32 1.0, %v3490_v36  ;;  %3503 = vpow2.f32 %v826_v37 }
 0x135   : > { %v792_v38 = vmin.f32 %v4414_v33, 20.0  ;;  %v4419_v39 = vadd.f32 %v729_v34, %v4369_v55  ;;  %v832_v47 = vmul.f32 1.442695, %v791_v35  ;;  %3505 = vpow2.f32 %v830_v41 }
 0x136   : > { %v733_v40 = vpop.f32.mrf.mxu0  ;;  %v3492_v42 = vpop.eup %3491  ;;  %v4429_v0 = vmul.f32 %v878_v46, %v878_v46 }
 0x137   : > { %v793_v43 = vmin.f32 %v4419_v39, 20.0  ;;  %v4423_v44 = vadd.f32 %v733_v40, %v4361_v51  ;;  %v834_v48 = vmul.f32 1.442695, %v792_v38  ;;  %v880_v56 = vadd.f32 1.0, %v3492_v42 }
 0x138   : > { %v735_v45 = vpop.f32.mrf.mxu0  ;;  %3507 = vpow2.f32 %v832_v47  ;;  %v974_v16 = vadd.f32 1.0, %v4429_v0 }
 0x139   : > { %v794_v50 = vmin.f32 %v4423_v44, 20.0  ;;  %v836_v57 = vmul.f32 1.442695, %v793_v43  ;;  %v4427_v61 = vadd.f32 %v735_v45, %v4369_v55  ;;  %3509 = vpow2.f32 %v834_v48 }
 0x13a   : > { %v737_v53 = vpop.f32.mrf.mxu0  ;;  %v3494_v58 = vpop.eup %3493  ;;  %v4437_v8 = vmul.f32 %v880_v56, %v880_v56 }
 0x13b   : > { %v3496_v63 = vpop.eup %3495  ;;  %v838_v1 = vmul.f32 1.442695, %v794_v50  ;;  %v4432_v3 = vadd.f32 %v737_v53, %v4361_v51  ;;  %v882_v9 = vadd.f32 1.0, %v3494_v58  ;;  %3511 = vpow2.f32 %v836_v57 }
 0x13c   : > { %v739_v62 = vpop.f32.mrf.mxu0  ;;  %v3498_v2 = vpop.eup %3497  ;;  %v879_v11 = vadd.f32 1.0, %v3496_v63  ;;  %v795_v12 = vmin.f32 %v4427_v61, 20.0  ;;  %v976_v24 = vadd.f32 1.0, %v4437_v8 }
 0x13d   : > { %v4435_v5 = vadd.f32 %v739_v62, %v4369_v55  ;;  %v3500_v15 = vpop.eup %3499  ;;  %v883_v17 = vadd.f32 1.0, %v3498_v2  ;;  %3513 = vpow2.f32 %v838_v1  ;;  %v796_v19 = vmin.f32 %v4432_v3, 20.0 }
 0x13e   : > { %v743_v6 = vpop.f32.mrf.mxu0  ;;  %v4444_v26 = vmul.f32 %v882_v9, %v882_v9  ;;  %v4446_v27 = vmul.f32 %v879_v11, %v879_v11  ;;  %v881_v28 = vadd.f32 1.0, %v3500_v15  ;;  %v840_v30 = vmul.f32 1.442695, %v795_v12 }
 0x13f   : > { %v797_v13 = vmin.f32 %v4435_v5, 20.0  ;;  %3515 = vrcp.f32 %v974_v16  ;;  %v4451_v34 = vmul.f32 %v883_v17, %v883_v17  ;;  %v842_v36 = vmul.f32 1.442695, %v796_v19 }
 0x140   : > { %v745_v14 = vpop.f32.mrf.mxu0  ;;  %v3502_v18 = vpop.eup %3501  ;;  %v978_v41 = vadd.f32 1.0, %v4444_v26  ;;  %v975_v45 = vadd.f32 1.0, %v4446_v27  ;;  %v4461_v46 = vmul.f32 %v881_v28, %v881_v28  ;;  %v4464_v47 = vadd.f32 %v743_v6, %v4361_v51 }
 0x141   : > { %v844_v21 = vmul.f32 1.442695, %v797_v13  ;;  %v4449_v31 = vadd.f32 %v745_v14, %v4369_v55  ;;  %v885_v35 = vadd.f32 1.0, %v3502_v18  ;;  %v3504_v40 = vpop.eup %3503  ;;  %v979_v50 = vadd.f32 1.0, %v4451_v34 }
 0x142   : > { %v747_v23 = vpop.f32.mrf.mxu0  ;;  %v3506_v43 = vpop.eup %3505  ;;  %5499 = vst [vmem:[#allocation19_spill] sm:$0xff] %v4464_v47  ;;  %v884_v57 = vadd.f32 1.0, %v3504_v40  ;;  %v977_v11 = vadd.f32 1.0, %v4461_v46  ;;  %v798_v12 = vmin.f32 %v4464_v47, 20.0 }
 0x143   : > { %3517 = vpow2.f32 %v844_v21  ;;  %v4454_v37 = vadd.f32 %v747_v23, %v4361_v51  ;;  %v799_v42 = vmin.f32 %v4449_v31, 20.0  ;;  %v4467_v53 = vmul.f32 %v885_v35, %v885_v35 }
 0x144   : > { %v749_v32 = vpop.f32.mrf.mxu0  ;;  %3519 = vrcp.f32 %v976_v24  ;;  %v886_v2 = vadd.f32 1.0, %v3506_v43  ;;  %v916_v18 = vmul.f32 %v884_v57, %v884_v57  ;;  %v846_v35 = vmul.f32 1.442695, %v798_v12 }
 0x145   : > { %3521 = vpow2.f32 %v840_v30  ;;  %v3508_v56 = vpop.eup %3507  ;;  %v848_v58 = vmul.f32 1.442695, %v799_v42  ;;  %v800_v62 = vmin.f32 %v4454_v37, 20.0  ;;  %v4471_v9 = vadd.f32 %v749_v32, %v4369_v55 }
 0x146   : > { %v4456_v38 = vpop.f32.mrf.mxu0  ;;  %3523 = vpow2.f32 %v842_v36  ;;  %v3510_v1 = vpop.eup %3509  ;;  %v981_v14 = vadd.f32 1.0, %v4467_v53  ;;  %v887_v15 = vadd.f32 1.0, %v3508_v56  ;;  %v918_v23 = vmul.f32 %v886_v2, %v886_v2 }
 0x147   : > { %3525 = vrcp.f32 %v978_v41  ;;  %v801_v16 = vmin.f32 %v4471_v9, 20.0  ;;  %v888_v19 = vadd.f32 1.0, %v3510_v1  ;;  %v850_v21 = vmul.f32 1.442695, %v800_v62 }
 0x148   : > { %v755_v48 = vpop.f32.mrf.mxu0  ;;  %v3512_v6 = vpop.eup %3511  ;;  %3527 = vrcp.f32 %v975_v45  ;;  %v3037_v32 = vadd.f32 -1.0, %v4429_v0  ;;  %v919_v40 = vmul.f32 %v887_v15, %v887_v15  ;;  %v3039_v45 = vadd.f32 -1.0, %v4437_v8 }
 0x149   : > { %3529 = vrcp.f32 %v979_v50  ;;  %v889_v24 = vadd.f32 1.0, %v3512_v6  ;;  %v852_v28 = vmul.f32 1.442695, %v801_v16  ;;  %v4478_v30 = vadd.f32 %v755_v48, %v4369_v55 }
 0x14a   : > { %v757_v63 = vpop.f32.mrf.mxu0  ;;  %v3514_v17 = vpop.eup %3513  ;;  %3531 = vpow2.f32 %v848_v58  ;;  %v980_v50 = vadd.f32 1.0, %v916_v18  ;;  %v920_v56 = vmul.f32 %v888_v19, %v888_v19  ;;  %v3041_v48 = vadd.f32 -1.0, %v4444_v26 }
 0x14b   : > { %3533 = vrcp.f32 %v977_v11  ;;  %v890_v41 = vadd.f32 1.0, %v3514_v17  ;;  %v803_v42 = vmin.f32 %v4478_v30, 20.0  ;;  %v982_v58 = vadd.f32 1.0, %v918_v23 }
 0x14c   : > { %v759_v13 = vpop.f32.mrf.mxu0  ;;  %3535 = vrcp.f32 %v981_v14  ;;  %v3516_v43 = vpop.eup %3515  ;;  %v921_v62 = vmul.f32 %v889_v24, %v889_v24  ;;  %v3042_v1 = vadd.f32 -1.0, %v4451_v34  ;;  %v4485_v2 = vadd.f32 -1.0, %v916_v18 }
 0x14d   : > { %3537 = vpow2.f32 %v850_v21  ;;  %v856_v6 = vmul.f32 1.442695, %v803_v42  ;;  %v983_v14 = vadd.f32 1.0, %v919_v40  ;;  %v4487_v8 = vmul.f32 %v890_v41, %v890_v41 }
 0x14e   : > { %v763_v36 = vpop.f32.mrf.mxu0  ;;  %3539 = vpow2.f32 %v852_v28  ;;  %v4491_v15 = vadd.f32 %v4456_v38, %v4361_v51  ;;  %v4494_v26 = vadd.f32 %v757_v63, %v4361_v51  ;;  %v984_v16 = vadd.f32 1.0, %v920_v56 }
 0x14f   : > { %3541 = vpow2.f32 %v846_v35  ;;  %v4497_v34 = vadd.f32 %v759_v13, %v4369_v55  ;;  %v1038_v19 = vmul.f32 %v3516_v43, %v3037_v32  ;;  %v3044_v21 = vadd.f32 -1.0, %v4467_v53 }
 0x150   : > { %v3518_v57 = vpop.eup %3517  ;;  %v765_v11 = vpop.f32.mrf.mxu0  ;;  %5500 = vst [vmem:[#allocation20_spill] sm:$0xff] %v4491_v15  ;;  %5501 = vst [vmem:[#allocation21_spill] sm:$0xff] %v4494_v26  ;;  %3543 = vrcp.f32 %v980_v50  ;;  %v985_v24 = vadd.f32 1.0, %v921_v62  ;;  %v4500_v41 = vadd.f32 -1.0, %v918_v23  ;;  %v986_v50 = vadd.f32 1.0, %v4487_v8 }
 0x151   : > { %v3520_v0 = vpop.eup %3519  ;;  %v893_v17 = vadd.f32 1.0, %v3518_v57  ;;  %3545 = vrcp.f32 %v982_v58  ;;  %v802_v13 = vmin.f32 %v4491_v15, 20.0  ;;  %v804_v32 = vmin.f32 %v4494_v26, 20.0 }
 0x152   : > { %v3522_v12 = vpop.eup %3521  ;;  %v1040_v35 = vmul.f32 %v3520_v0, %v3039_v45  ;;  %3547 = vpow2.f32 %v856_v6  ;;  %v767_v63 = vpop.f32.mrf.mxu0  ;;  %v805_v23 = vmin.f32 %v4497_v34, 20.0  ;;  %v4511_v58 = vmul.f32 %v1038_v19, %v4366_v54 }
 0x153   : > { %v3524_v18 = vpop.eup %3523  ;;  %v891_v38 = vadd.f32 1.0, %v3522_v12  ;;  %3549 = vrcp.f32 %v983_v14  ;;  %v4507_v57 = vmul.f32 %v893_v17, %v893_v17  ;;  %v4513_v6 = vadd.f32 -1.0, %v919_v40 }
 0x154   : > { %v3526_v28 = vpop.eup %3525  ;;  %3551 = vrcp.f32 %v984_v16  ;;  %v892_v53 = vadd.f32 1.0, %v3524_v18  ;;  %v858_v14 = vmul.f32 1.442695, %v804_v32  ;;  %v860_v52 = vmul.f32 1.442695, %v805_v23  ;;  %v769_v16 = vpop.f32.mrf.mxu0 }
 0x155   : > { %v4502_v42 = vpop.eup %3527  ;;  %v1042_v0 = vmul.f32 %v3526_v28, %v3041_v48  ;;  %3553 = vrcp.f32 %v985_v24  ;;  %v923_v12 = vmul.f32 %v891_v38, %v891_v38  ;;  %v4516_v49 = vadd.f32 %v763_v36, %v4361_v51 }
 0x156   : > { %v3530_v43 = vpop.eup %3529  ;;  %v4519_v17 = vmul.f32 %v1040_v35, %v4373_v59  ;;  %v4521_v15 = vadd.f32 -1.0, %v920_v56  ;;  %3555 = vrcp.f32 %v986_v50  ;;  %v854_v54 = vmul.f32 1.442695, %v802_v13 }
 0x157   : > { %v3532_v45 = vpop.eup %3531  ;;  %5502 = vst [vmem:[#allocation22_spill] sm:$0xff] %v4516_v49  ;;  %v4523_v48 = vmul.f32 %v892_v53, %v892_v53  ;;  %v989_v40 = vadd.f32 1.0, %v4507_v57  ;;  %v4527_v28 = vadd.f32 %v765_v11, %v4369_v55  ;;  %v4530_v38 = vmul.f32 %v1042_v0, %v4382_v4  ;;  %v773_v53 = vpop.f32.mrf.mxu0 }
 0x158   : > { %v3534_v18 = vpop.eup %3533  ;;  %v895_v24 = vadd.f32 1.0, %v3532_v45  ;;  %v1043_v32 = vmul.f32 %v3530_v43, %v3042_v1  ;;  %v3048_v59 = vadd.f32 -1.0, %v921_v62  ;;  %3557 = vpow2.f32 %v858_v14 }
 0x159   : > { %v3536_v19 = vpop.eup %3535  ;;  %5503 = vst [vmem:[#allocation23_spill] sm:$0xff] %v4527_v28  ;;  %v987_v35 = vadd.f32 1.0, %v923_v12  ;;  %3559 = vpow2.f32 %v860_v52  ;;  %v806_v50 = vmin.f32 %v4516_v49, 20.0  ;;  %v807_v13 = vmin.f32 %v4527_v28, 20.0 }
 0x15a   : > { %v3538_v36 = vpop.eup %3537  ;;  %v1045_v45 = vmul.f32 %v3536_v19, %v3044_v21  ;;  %3561 = vpow2.f32 %v854_v54  ;;  %v4535_v11 = vadd.f32 %v767_v63, %v4361_v51  ;;  %v988_v4 = vadd.f32 1.0, %v4523_v48 }
 0x15b   : > { %v3540_v56 = vpop.eup %3539  ;;  %3563 = vrcp.f32 %v989_v40  ;;  %v4538_v62 = vmul.f32 %v895_v24, %v895_v24  ;;  %v864_v1 = vmul.f32 1.442695, %v807_v13  ;;  %v896_v52 = vadd.f32 1.0, %v3538_v36  ;;  %v775_v40 = vpop.f32.mrf.mxu0 }
 0x15c   : > { %v3542_v23 = vpop.eup %3541  ;;  %v897_v26 = vadd.f32 1.0, %v3540_v56  ;;  %5504 = vst [vmem:[#allocation24_spill] sm:$0xff] %v4535_v11  ;;  %v808_v14 = vmin.f32 %v4535_v11, 20.0  ;;  %v3038_v49 = vadd.f32 -1.0, %v4446_v27  ;;  %v862_v54 = vmul.f32 1.442695, %v806_v50 }
 0x15d   : > { %v3544_v43 = vpop.eup %3543  ;;  %3565 = vpow2.f32 %v864_v1  ;;  %v3040_v63 = vadd.f32 -1.0, %v4461_v46  ;;  %v4548_v19 = vadd.f32 %v769_v16, %v4369_v55  ;;  %v894_v56 = vadd.f32 1.0, %v3542_v23 }
 0x15e   : > { %v4540_v0 = vmul.f32 %v897_v26, %v897_v26  ;;  %v4544_v21 = vpop.eup %3545  ;;  %3567 = vrcp.f32 %v987_v35  ;;  %v866_v36 = vmul.f32 1.442695, %v808_v14  ;;  %v1039_v26 = vmul.f32 %v4502_v42, %v3038_v49  ;;  %v777_v42 = vpop.f32.mrf.mxu0 }
 0x15f   : > { %v3548_v24 = vpop.eup %3547  ;;  %v1041_v28 = vmul.f32 %v3534_v18, %v3040_v63  ;;  %v809_v50 = vmin.f32 %v4548_v19, 20.0  ;;  %v1075_v46 = vmul.f32 %v1043_v32, %v4391_v10  ;;  %v1077_v16 = vmul.f32 %v1045_v45, %v4398_v20 }
 0x160   : > { %v3550_v13 = vpop.eup %3549  ;;  %v993_v11 = vadd.f32 1.0, %v4540_v0  ;;  %v899_v27 = vadd.f32 1.0, %v3548_v24  ;;  %v4555_v47 = vadd.f32 -1.0, %v923_v12  ;;  %3569 = vrcp.f32 %v988_v4 }
 0x161   : > { %v3552_v1 = vpop.eup %3551  ;;  %v991_v23 = vadd.f32 1.0, %v4538_v62  ;;  %v4558_v14 = vmul.f32 %v896_v52, %v896_v52  ;;  %3571 = vpow2.f32 %v862_v54  ;;  %v1071_v49 = vmul.f32 %v1039_v26, %v4376_v60 }
 0x162   : > { %v3554_v35 = vpop.eup %3553  ;;  %v4561_v18 = vmul.f32 %v899_v27, %v899_v27  ;;  %3573 = vpow2.f32 %v866_v36  ;;  %v1073_v63 = vmul.f32 %v1041_v28, %v4387_v7  ;;  %v868_v10 = vmul.f32 1.442695, %v809_v50 }
 0x163   : > { %v4564_v32 = vpop.eup %3555  ;;  %v1044_v20 = vmul.f32 %v3544_v43, %v4485_v2  ;;  %v1047_v12 = vmul.f32 %v3550_v13, %v4513_v6  ;;  %v4568_v45 = vmul.f32 %v894_v56, %v894_v56  ;;  %3575 = vrcp.f32 %v993_v11  ;;  %v779_v6 = vpop.f32.mrf.mxu0 }
 0x164   : > { %v1049_v4 = vmul.f32 %v3554_v35, %v3048_v59  ;;  %v1103_v52 = vpack.c.bf16 %v1073_v63, %v1071_v49  ;;  %3577 = vpow2.f32 %v868_v10  ;;  %v4571_v60 = vadd.f32 %v773_v53, %v4361_v51 }
 0x165   : > { %v3558_v54 = vpop.eup %3557  ;;  %v992_v24 = vadd.f32 1.0, %v4558_v14  ;;  %v1102_v7 = vpack.c.bf16 %v4519_v17, %v4511_v58  ;;  %v4577_v28 = vadd.f32 %v775_v40, %v4369_v55  ;;  %v4580_v2 = vadd.f32 %v777_v42, %v4361_v51 }
 0x166   : > { %v3560_v11 = vpop.eup %3559  ;;  %3579 = vrcp.f32 %v991_v23  ;;  %v995_v59 = vadd.f32 1.0, %v4561_v18  ;;  %1354 = vmatprep.mubr.bf16.mxu1 %v1103_v52  ;;  %v810_v53 = vmin.f32 %v4571_v60, 20.0  ;;  %v1105_v43 = vpack.c.bf16 %v1077_v16, %v1075_v46 }
 0x167   : > { %v3562_v56 = vpop.eup %3561  ;;  %v1076_v36 = vmul.f32 %v1044_v20, %v4402_v22  ;;  %v901_v26 = vadd.f32 1.0, %v3560_v11  ;;  %1355 = vmatmul.mubr.bf16.vlgmr.msra.gmra.mxu1 %v1102_v7  ;;  %v811_v58 = vmin.f32 %v4577_v28, 20.0  ;;  %v812_v17 = vmin.f32 %v4580_v2, 20.0 }
 0x168   : > { %v3564_v51 = vpop.eup %3563  ;;  %v3052_v40 = vadd.f32 -1.0, %v4507_v57  ;;  %v990_v13 = vadd.f32 1.0, %v4568_v45  ;;  %v870_v27 = vmul.f32 1.442695, %v810_v53  ;;  %1364 = vmatprep.mubr.bf16.mxu1 %v1105_v43  ;;  %v4590_v50 = vadd.f32 %v779_v6, %v4369_v55 }
 0x169   : > { %v1081_v46 = vmul.f32 %v1049_v4, %v4419_v39  ;;  %3581 = vrcp.f32 %v992_v24  ;;  %v900_v22 = vadd.f32 1.0, %v3558_v54  ;;  %v4593_v16 = vmul.f32 %v901_v26, %v901_v26 }
 0x16a   : > { %v3566_v35 = vpop.eup %3565  ;;  %v1079_v23 = vmul.f32 %v1047_v12, %v4409_v29  ;;  %3583 = vrcp.f32 %v995_v59  ;;  %v872_v49 = vmul.f32 1.442695, %v811_v58  ;;  %v874_v42 = vmul.f32 1.442695, %v812_v17 }
 0x16b   : > { %v3568_v57 = vpop.eup %3567  ;;  %v1048_v63 = vmul.f32 %v3552_v1, %v4521_v15  ;;  %v898_v10 = vadd.f32 1.0, %v3562_v56  ;;  %v997_v20 = vadd.f32 1.0, %v4593_v16  ;;  %3585 = vpow2.f32 %v870_v27 }
 0x16c   : > { %v1053_v55 = vmul.f32 %v3564_v51, %v3052_v40  ;;  %v903_v52 = vadd.f32 1.0, %v3566_v35  ;;  %3587 = vpow2.f32 %v872_v49  ;;  %v813_v39 = vmin.f32 %v4590_v50, 20.0 }
 0x16d   : > { %v3570_v4 = vpop.eup %3569  ;;  %v4599_v54 = vmul.f32 %v900_v22, %v900_v22  ;;  %3589 = vrcp.f32 %v997_v20  ;;  %v1104_v29 = vpack.c.bf16 %v1076_v36, %v4530_v38  ;;  %v1107_v12 = vpack.c.bf16 %v1081_v46, %v1079_v23 }
 0x16e   : > { %v3572_v24 = vpop.eup %3571  ;;  %v1051_v7 = vmul.f32 %v3568_v57, %v4555_v47  ;;  %v4603_v15 = vmul.f32 %v903_v52, %v903_v52  ;;  %3591 = vpow2.f32 %v874_v42  ;;  %v876_v1 = vmul.f32 1.442695, %v813_v39 }
 0x16f   : > { %v3574_v6 = vpop.eup %3573  ;;  %v1046_v11 = vmul.f32 %v4544_v21, %v4500_v41  ;;  %3593 = vrcp.f32 %v990_v13  ;;  %v4607_v59 = vmul.f32 %v898_v10, %v898_v10  ;;  %1365 = vmatmul.mubr.bf16.gmra.mxu1 %v1104_v29  ;;  %v3049_v43 = vadd.f32 -1.0, %v4487_v8 }
 0x170   : > { %v3576_v53 = vpop.eup %3575  ;;  %v1085_v38 = vmul.f32 %v1053_v55, %v4435_v5  ;;  %1374 = vmatprep.mubr.bf16.mxu1 %v1107_v12  ;;  %v1080_v47 = vmul.f32 %v1048_v63, %v4414_v33  ;;  %v996_v36 = vadd.f32 1.0, %v4599_v54  ;;  %v904_v26 = vadd.f32 1.0, %v3574_v6 }
 0x171   : > { %v3578_v56 = vpop.eup %3577  ;;  %3595 = vpow2.f32 %v876_v1  ;;  %v1083_v58 = vmul.f32 %v1051_v7, %v4427_v61  ;;  %v3056_v41 = vadd.f32 -1.0, %v4540_v0  ;;  %v999_v21 = vadd.f32 1.0, %v4603_v15 }
 0x172   : > { %v905_v17 = vadd.f32 1.0, %v3578_v56  ;;  %v1078_v8 = vmul.f32 %v1046_v11, %v4406_v25  ;;  %v3051_v5 = vadd.f32 -1.0, %v4523_v48  ;;  %v994_v40 = vadd.f32 1.0, %v4607_v59 }
 0x173   : > { %v3580_v51 = vpop.eup %3579  ;;  %v902_v13 = vadd.f32 1.0, %v3572_v24  ;;  %v3054_v33 = vadd.f32 -1.0, %v4538_v62  ;;  %v1057_v27 = vmul.f32 %v3576_v53, %v3056_v41  ;;  %v1109_v22 = vpack.c.bf16 %v1085_v38, %v1083_v58 }
 0x174   : > { %v4620_v46 = vmul.f32 %v905_v17, %v905_v17  ;;  %v1052_v61 = vmul.f32 %v3570_v4, %v3051_v5  ;;  %3597 = vrcp.f32 %v996_v36  ;;  %v4622_v0 = vmul.f32 %v904_v26, %v904_v26  ;;  %v5505_v5 = vld [vmem:[#allocation19_spill] sm:$0xff] }
 0x175   : > { %v1106_v35 = vpack.c.bf16 %v1080_v47, %v1078_v8  ;;  %v1055_v49 = vmul.f32 %v3580_v51, %v3054_v33  ;;  %3599 = vrcp.f32 %v999_v21  ;;  %v1050_v42 = vmul.f32 %v4564_v32, %v3049_v43 }
 0x176   : > { %v3582_v23 = vpop.eup %3581  ;;  %v1001_v25 = vadd.f32 1.0, %v4620_v46  ;;  %3601 = vrcp.f32 %v994_v40  ;;  %v4626_v57 = vmul.f32 %v902_v13, %v902_v13  ;;  %v1089_v63 = vmul.f32 %v1057_v27, %v4471_v9 }
 0x177   : > { %v3584_v48 = vpop.eup %3583  ;;  %1375 = vmatmul.mubr.bf16.gmra.mxu1 %v1106_v35  ;;  %v1084_v20 = vmul.f32 %v1052_v61, %v4432_v3  ;;  %v1000_v55 = vadd.f32 1.0, %v4622_v0  ;;  %v1087_v39 = vmul.f32 %v1055_v49, %v4449_v31  ;;  %v3055_v4 = vadd.f32 -1.0, %v4558_v14 }
 0x178   : > { %v3586_v62 = vpop.eup %3585  ;;  %3603 = vrcp.f32 %v1001_v25  ;;  %1384 = vmatprep.mubr.bf16.mxu1 %v1109_v22  ;;  %v3060_v32 = vadd.f32 -1.0, %v4593_v16  ;;  %v1082_v24 = vmul.f32 %v1050_v42, %v4423_v44  ;;  %v3058_v9 = vadd.f32 -1.0, %v4561_v18 }
 0x179   : > { %v3588_v10 = vpop.eup %3587  ;;  %v998_v7 = vadd.f32 1.0, %v4626_v57  ;;  %v906_v1 = vadd.f32 1.0, %v3586_v62  ;;  %v1111_v43 = vpack.c.bf16 %v1089_v63, %v1087_v39  ;;  %v3053_v31 = vadd.f32 -1.0, %v4568_v45  ;;  %v5506_v62 = vld [vmem:[#allocation21_spill] sm:$0xff] }
 0x17a   : > { %v3590_v52 = vpop.eup %3589  ;;  %v907_v29 = vadd.f32 1.0, %v3588_v10  ;;  %v1056_v38 = vmul.f32 %v3582_v23, %v3055_v4  ;;  %3605 = vrcp.f32 %v1000_v55  ;;  %v1108_v14 = vpack.c.bf16 %v1084_v20, %v1082_v24  ;;  %v5508_v20 = vld [vmem:[#allocation20_spill] sm:$0xff] }
 0x17b   : > { %v3592_v12 = vpop.eup %3591  ;;  %v1061_v3 = vmul.f32 %v3590_v52, %v3060_v32  ;;  %v1059_v56 = vmul.f32 %v3584_v48, %v3058_v9  ;;  %3607 = vrcp.f32 %v998_v7  ;;  %v938_v18 = vmul.f32 %v906_v1, %v906_v1  ;;  %v5509_v7 = vld [vmem:[#allocation24_spill] sm:$0xff] }
 0x17c   : > { %v3594_v6 = vpop.eup %3593  ;;  %v939_v11 = vmul.f32 %v907_v29, %v907_v29  ;;  %v908_v53 = vadd.f32 1.0, %v3592_v12  ;;  %v1088_v21 = vmul.f32 %v1056_v38, %v4454_v37  ;;  %v3059_v13 = vadd.f32 -1.0, %v4599_v54 }
 0x17d   : > { %v1054_v44 = vmul.f32 %v3594_v6, %v3053_v31  ;;  %v1093_v58 = vmul.f32 %v1061_v3, %v4497_v34  ;;  %v1091_v51 = vmul.f32 %v1059_v56, %v4478_v30  ;;  %v1002_v33 = vadd.f32 1.0, %v938_v18 }
 0x17e   : > { %v3596_v16 = vpop.eup %3595  ;;  %v1003_v47 = vadd.f32 1.0, %v939_v11  ;;  %v940_v36 = vmul.f32 %v908_v53, %v908_v53  ;;  %v3062_v61 = vadd.f32 -1.0, %v4603_v15  ;;  %v3064_v34 = vadd.f32 -1.0, %v4620_v46  ;;  %v5507_v46 = vld [vmem:[#allocation23_spill] sm:$0xff] }
 0x17f   : > { %v909_v26 = vadd.f32 1.0, %v3596_v16  ;;  %1385 = vmatmul.mubr.bf16.gmra.mxu1 %v1108_v14  ;;  %v1086_v40 = vmul.f32 %v1054_v44, %v5505_v5  ;;  %v1113_v35 = vpack.c.bf16 %v1093_v58, %v1091_v51  ;;  %v3057_v23 = vadd.f32 -1.0, %v4607_v59  ;;  %v3464_v51 = vld [vmem:[%s4279_s24 + $0x4] ss:$8 sps:$4 sm:$0xff]   ;;  %v3467_v5 = vld [vmem:[%s4279_s24 + $0xf4] ss:$8 sps:$4 sm:$0xff]  }
 0x180   : > { %v1004_v41 = vadd.f32 1.0, %v940_v36  ;;  %1394 = vmatprep.mubr.bf16.mxu1 %v1111_v43  ;;  %3609 = vrcp.f32 %v1003_v47  ;;  %v3063_v59 = vadd.f32 -1.0, %v4622_v0  ;;  %v3061_v4 = vadd.f32 -1.0, %v4626_v57  ;;  %v5510_v43 = vld [vmem:[#allocation22_spill] sm:$0xff] }
 0x181   : > { %v941_v45 = vmul.f32 %v909_v26, %v909_v26  ;;  %v3598_v17 = vpop.eup %3597  ;;  %v1110_v30 = vpack.c.bf16 %v1088_v21, %v1086_v40  ;;  %v3066_v9 = vadd.f32 -1.0, %v939_v11  ;;  %v3067_v0 = vadd.f32 -1.0, %v940_v36  ;;  %v3453_v21 = vld [vmem:[%s4279_s24 + $0x30] ss:$8 sps:$4 sm:$0xff]  }
 0x182   : > { %v3600_v8 = vpop.eup %3599  ;;  %3611 = vrcp.f32 %v1004_v41  ;;  %v1060_v49 = vmul.f32 %v3598_v17, %v3059_v13  ;;  %v3065_v14 = vadd.f32 -1.0, %v938_v18  ;;  %v3450_v41 = vld [vmem:[%s4279_s24 + $0x40] ss:$8 sps:$4 sm:$0xff]   ;;  %v3459_v17 = vld [vmem:[%s4279_s24 + $0x10] ss:$8 sps:$4 sm:$0xff]  }
 0x183   : > { %v1005_v27 = vadd.f32 1.0, %v941_v45  ;;  %v3602_v22 = vpop.eup %3601  ;;  %v1063_v25 = vmul.f32 %v3600_v8, %v3062_v61  ;;  %v3068_v3 = vadd.f32 -1.0, %v941_v45  ;;  %v3456_v45 = vld [vmem:[%s4279_s24 + $0x20] ss:$8 sps:$4 sm:$0xff]   ;;  %v3465_v40 = vld [vmem:[%s4279_s24 + $0xf0] ss:$8 sps:$4 sm:$0xff]  }
 0x184   : > { %v1058_v42 = vmul.f32 %v3602_v22, %v3057_v23  ;;  %v1092_v15 = vmul.f32 %v1060_v49, %v5506_v62  ;;  %v3462_v8 = vld [vmem:[%s4279_s24] ss:$8 sps:$4 sm:$0xff]   ;;  %v3470_v13 = vld [vmem:[%s4279_s24 + $0xe4] ss:$8 sps:$4 sm:$0xff]   ;;  %v3471_v22 = vld [vmem:[%s4279_s24 + $0xd0] ss:$8 sps:$4 sm:$0xff]  }
 0x185   : > { %v3604_v37 = vpop.eup %3603  ;;  %3613 = vrcp.f32 %v1005_v27  ;;  %v1095_v10 = vmul.f32 %v1063_v25, %v5507_v46  ;;  %v3473_v27 = vld [vmem:[%s4279_s24 + $0xd4] ss:$8 sps:$4 sm:$0xff]   ;;  %v3476_v61 = vld [vmem:[%s4279_s24 + $0xc4] ss:$8 sps:$4 sm:$0xff]   ;;  %v3480_v49 = vld [vmem:[%s4279_s24 + $0xa0] ss:$8 sps:$4 sm:$0xff]  }
 0x186   : > { %v1065_v48 = vmul.f32 %v3604_v37, %v3064_v34  ;;  %3615 = vrcp.f32 %v1002_v33  ;;  %v1090_v55 = vmul.f32 %v1058_v42, %v5508_v20  ;;  %v3468_v33 = vld [vmem:[%s4279_s24 + $0xe0] ss:$8 sps:$4 sm:$0xff]   ;;  %v3477_v37 = vld [vmem:[%s4279_s24 + $0xb0] ss:$8 sps:$4 sm:$0xff]   ;;  %v3482_v23 = vld [vmem:[%s4279_s24 + $0xa4] ss:$8 sps:$4 sm:$0xff]  }
 0x187   : > { %1395 = vmatmul.mubr.bf16.gmra.mxu1 %v1110_v30  ;;  %v3606_v63 = vpop.eup %3605  ;;  %v3474_v34 = vld [vmem:[%s4279_s24 + $0xc0] ss:$8 sps:$4 sm:$0xff]   ;;  %v3485_v30 = vld [vmem:[%s4279_s24 + $0x94] ss:$8 sps:$4 sm:$0xff]   ;;  %v3483_v25 = vld [vmem:[%s4279_s24 + $0x90] ss:$8 sps:$4 sm:$0xff]  }
 0x188   : > { %v1097_v54 = vmul.f32 %v1065_v48, %v4548_v19  ;;  %1404 = vmatprep.mubr.bf16.mxu1 %v1113_v35  ;;  %v3608_v52 = vpop.eup %3607  ;;  %v1064_v32 = vmul.f32 %v3606_v63, %v3063_v59  ;;  %v1112_v29 = vpack.c.bf16 %v1092_v15, %v1090_v55  ;;  %v3479_v35 = vld [vmem:[%s4279_s24 + $0xb4] ss:$8 sps:$4 sm:$0xff]   ;;  %v3488_v48 = vld [vmem:[%s4279_s24 + $0x84] ss:$8 sps:$4 sm:$0xff]   ;;  %v3486_v42 = vld [vmem:[%s4279_s24 + $0x80] ss:$8 sps:$4 sm:$0xff]  }
 0x189   : > { %v1062_v24 = vmul.f32 %v3608_v52, %v3061_v4  ;;  %v5511_v62 = vld [vmem:[#allocation17_spill] sm:$0xff]  ;;  %v5512_v63 = vld [vmem:[#allocation18_spill] sm:$0xff] }
 0x18a   : > { %v1115_v39 = vpack.c.bf16 %v1097_v54, %v1095_v10  ;;  %v1096_v1 = vmul.f32 %v1064_v32, %v5509_v7  ;;  %v1150_v54 = vld [vmem:[%s533_s8] sm:$0x3] }
 0x18b   : > { %v1094_v31 = vmul.f32 %v1062_v24, %v5510_v43  ;;  %v4689_v15 = vrot.slane %v1150_v54, %v5511_v62  ;;  %v4692_v46 = vrot.slane %v1150_v54, %v5512_v63 }
 0x18d   : > { %v3610_v12 = vpop.eup %3609  ;;  %v1114_v47 = vpack.c.bf16 %v1096_v1, %v1094_v31 }
 0x18e   : > { %v1067_v6 = vmul.f32 %v3610_v12, %v3066_v9 }
 0x18f   : > { %1405 = vmatmul.mubr.bf16.gmra.mxu1 %v1112_v29  ;;  %v3612_v19 = vpop.eup %3611 }
 0x190   : > { %1414 = vmatprep.mubr.bf16.mxu1 %v1115_v39  ;;  %v1099_v16 = vmul.f32 %v1067_v6, %v4577_v28  ;;  %v1068_v11 = vmul.f32 %v3612_v19, %v3067_v0  ;;  %v3452_v28 = vld [vmem:[%s4279_s24 + $0x44] ss:$8 sps:$4 sm:$0xff]  }
 0x191   : > { %1981 = vmatprep.subr.bf16.mxu0 %v3452_v28 }
 0x192   : > { %v3614_v53 = vpop.eup %3613  ;;  %v1100_v36 = vmul.f32 %v1068_v11, %v4580_v2  ;;  %1982 = vmatpush1.bf16.msra.mxu0 %v3450_v41  ;;  %v3458_v2 = vld [vmem:[%s4279_s24 + $0x24] ss:$8 sps:$4 sm:$0xff]  }
 0x193   : > { %v1069_v38 = vmul.f32 %v3614_v53, %v3068_v3  ;;  %v3616_v57 = vpop.eup %3615 }
 0x194   : > { %v1066_v44 = vmul.f32 %v3616_v57, %v3065_v14 }
 0x195   : > { %v1101_v56 = vmul.f32 %v1069_v38, %v4590_v50  ;;  %v3455_v50 = vld [vmem:[%s4279_s24 + $0x34] ss:$8 sps:$4 sm:$0xff]  }
 0x196   : > { %v1098_v58 = vmul.f32 %v1066_v44, %v4571_v60  ;;  %1983 = vmatprep.subr.bf16.mxu0 %v3455_v50  ;;  %v3461_v60 = vld [vmem:[%s4279_s24 + $0x14] ss:$8 sps:$4 sm:$0xff]  }
 0x197   : > { %1415 = vmatmul.mubr.bf16.gmra.mxu1 %v1114_v47  ;;  %v1117_v26 = vpack.c.bf16 %v1101_v56, %v1099_v16  ;;  %1984 = vmatpush1.bf16.msra.mxu0 %v3453_v21 }
 0x198   : > { %v1116_v18 = vpack.c.bf16 %v1100_v36, %v1098_v58  ;;  %1985 = vmatprep.subr.bf16.mxu0 %v3458_v2 }
 0x199   : > { %1424 = vmatprep.mubr.bf16.mxu1 %v1117_v26 }
 0x19b   : > { %1986 = vmatpush1.bf16.msra.mxu0 %v3456_v45 }
 0x19c   : > { %1987 = vmatprep.subr.bf16.mxu0 %v3461_v60 }
 0x19f   : > { %1425 = vmatmul.mubr.bf16.gmra.mxu1 %v1116_v18  ;;  %1988 = vmatpush1.bf16.msra.mxu0 %v3459_v17 }
 0x1a0   : > { %1989 = vmatprep.subr.bf16.mxu0 %v3464_v51 }
 0x1a3   : > { %1990 = vmatpush1.bf16.msra.mxu0 %v3462_v8 }
 0x1a4   : > { %1991 = vmatprep.subr.bf16.mxu0 %v3467_v5 }
 0x1a7   : > { %1992 = vmatpush2.bf16.msra.mxu0 %v3465_v40 }
 0x1a8   : > { %1993 = vmatprep.subr.bf16.mxu0 %v3470_v13 }
 0x1ab   : > { %1994 = vmatpush2.bf16.msra.mxu0 %v3468_v33 }
 0x1ac   : > { %1995 = vmatprep.subr.bf16.mxu0 %v3473_v27 }
 0x1af   : > { %1996 = vmatpush2.bf16.msra.mxu0 %v3471_v22 }
 0x1b0   : > { %1997 = vmatprep.subr.bf16.mxu0 %v3476_v61 }
 0x1b3   : > { %1998 = vmatpush2.bf16.msra.mxu0 %v3474_v34 }
 0x1b4   : > { %1999 = vmatprep.subr.bf16.mxu0 %v3479_v35 }
 0x1b7   : > { %2000 = vmatpush2.bf16.msra.mxu0 %v3477_v37 }
 0x1b8   : > { %2001 = vmatprep.subr.bf16.mxu0 %v3482_v23 }
 0x1bb   : > { %2002 = vmatpush2.bf16.msra.mxu0 %v3480_v49 }
 0x1bc   : > { %2003 = vmatprep.subr.bf16.mxu0 %v3485_v30 }
 0x1bf   : > { %2004 = vmatpush2.bf16.msra.mxu0 %v3483_v25 }
 0x1c0   : > { %2005 = vmatprep.subr.bf16.mxu0 %v3488_v48 }
 0x1c3   : > { %2006 = vmatpush2.bf16.msra.mxu0 %v3486_v42 }
 0x227   : > { %v1356_v10 = vpop.f32.mrf.mxu1 }
 0x228   : > { %v4695_v20 = vadd.f32 %v1356_v10, %v4689_v15 }
 0x229   : > { %v1358_v55 = vpop.f32.mrf.mxu1 }
 0x22a   : > { %v1435_v59 = vmin.f32 %v4695_v20, 20.0  ;;  %v4699_v52 = vadd.f32 %v1358_v55, %v4692_v46 }
 0x22b   : > { %v1360_v39 = vpop.f32.mrf.mxu1 }
 0x22c   : > { %v1467_v4 = vmul.f32 1.442695, %v1435_v59  ;;  %v1436_v32 = vmin.f32 %v4699_v52, 20.0  ;;  %v4703_v29 = vadd.f32 %v1360_v39, %v4689_v15 }
 0x22d   : > { %v1362_v12 = vpop.f32.mrf.mxu1 }
 0x22e   : > { %3617 = vpow2.f32 %v1467_v4  ;;  %v1469_v24 = vmul.f32 1.442695, %v1436_v32  ;;  %v1437_v9 = vmin.f32 %v4703_v29, 20.0  ;;  %v4707_v19 = vadd.f32 %v1362_v12, %v4692_v46 }
 0x22f   : > { %v1366_v7 = vpop.f32.mrf.mxu1 }
 0x230   : > { %3619 = vpow2.f32 %v1469_v24  ;;  %v1471_v1 = vmul.f32 1.442695, %v1437_v9  ;;  %v1438_v6 = vmin.f32 %v4707_v19, 20.0  ;;  %v4711_v3 = vadd.f32 %v1366_v7, %v4689_v15 }
 0x231   : > { %v1368_v53 = vpop.f32.mrf.mxu1 }
 0x232   : > { %3621 = vpow2.f32 %v1471_v1  ;;  %v1473_v43 = vmul.f32 1.442695, %v1438_v6  ;;  %v1439_v31 = vmin.f32 %v4711_v3, 20.0  ;;  %v4715_v0 = vadd.f32 %v1368_v53, %v4692_v46 }
 0x233   : > { %v1370_v38 = vpop.f32.mrf.mxu1 }
 0x234   : > { %v1475_v57 = vmul.f32 1.442695, %v1439_v31  ;;  %v1440_v14 = vmin.f32 %v4715_v0, 20.0  ;;  %v4719_v16 = vadd.f32 %v1370_v38, %v4689_v15  ;;  %3623 = vpow2.f32 %v1473_v43 }
 0x235   : > { %v1372_v11 = vpop.f32.mrf.mxu1 }
 0x236   : > { %v1477_v56 = vmul.f32 1.442695, %v1440_v14  ;;  %v1441_v47 = vmin.f32 %v4719_v16, 20.0  ;;  %v4723_v44 = vadd.f32 %v1372_v11, %v4692_v46  ;;  %3625 = vpow2.f32 %v1475_v57 }
 0x237   : > { %v1376_v26 = vpop.f32.mrf.mxu1 }
 0x238   : > { %3627 = vpow2.f32 %v1477_v56  ;;  %v1442_v36 = vmin.f32 %v4723_v44, 20.0  ;;  %v4727_v58 = vadd.f32 %v1376_v26, %v4689_v15  ;;  %v1479_v18 = vmul.f32 1.442695, %v1441_v47 }
 0x239   : > { %v1378_v28 = vpop.f32.mrf.mxu1 }
 0x23a   : > { %v1481_v41 = vmul.f32 1.442695, %v1442_v36  ;;  %v1443_v50 = vmin.f32 %v4727_v58, 20.0  ;;  %v4731_v21 = vadd.f32 %v1378_v28, %v4692_v46 }
 0x23b   : > { %v3618_v2 = vpop.eup %3617  ;;  %v1380_v45 = vpop.f32.mrf.mxu1 }
 0x23c   : > { %3629 = vpow2.f32 %v1481_v41  ;;  %v1483_v60 = vmul.f32 1.442695, %v1443_v50  ;;  %v1444_v17 = vmin.f32 %v4731_v21, 20.0  ;;  %v4735_v8 = vadd.f32 %v1380_v45, %v4689_v15 }
 0x23d   : > { %v3620_v51 = vpop.eup %3619  ;;  %3631 = vpow2.f32 %v1479_v18  ;;  %v1382_v5 = vpop.f32.mrf.mxu1  ;;  %v1531_v40 = vadd.f32 1.0, %v3618_v2 }
 0x23e   : > { %3633 = vpow2.f32 %v1483_v60  ;;  %v1485_v13 = vmul.f32 1.442695, %v1444_v17  ;;  %v1532_v27 = vadd.f32 1.0, %v3620_v51  ;;  %v1445_v22 = vmin.f32 %v4735_v8, 20.0 }
 0x23f   : > { %v3622_v33 = vpop.eup %3621  ;;  %v4739_v61 = vadd.f32 %v1382_v5, %v4692_v46  ;;  %v1386_v34 = vpop.f32.mrf.mxu1  ;;  %v4742_v30 = vmul.f32 %v1531_v40, %v1531_v40 }
 0x240   : > { %v1533_v35 = vadd.f32 1.0, %v3622_v33  ;;  %3635 = vpow2.f32 %v1485_v13  ;;  %v1487_v37 = vmul.f32 1.442695, %v1445_v22  ;;  %v4744_v48 = vmul.f32 %v1532_v27, %v1532_v27 }
 0x241   : > { %v1446_v23 = vmin.f32 %v4739_v61, 20.0  ;;  %v1388_v49 = vpop.f32.mrf.mxu1  ;;  %v3624_v25 = vpop.eup %3623  ;;  %v4749_v59 = vadd.f32 %v1386_v34, %v4689_v15  ;;  %v1627_v12 = vadd.f32 1.0, %v4742_v30 }
 0x242   : > { %3637 = vpow2.f32 %v1487_v37  ;;  %v4746_v55 = vmul.f32 %v1533_v35, %v1533_v35  ;;  %v4752_v4 = vadd.f32 %v1388_v49, %v4692_v46  ;;  %v1534_v24 = vadd.f32 1.0, %v3624_v25 }
 0x243   : > { %v1489_v42 = vmul.f32 1.442695, %v1446_v23  ;;  %v1390_v54 = vpop.f32.mrf.mxu1  ;;  %v3626_v10 = vpop.eup %3625  ;;  %v1628_v7 = vadd.f32 1.0, %v4744_v48  ;;  %v1447_v38 = vmin.f32 %v4749_v59, 20.0 }
 0x244   : > { %v4756_v9 = vadd.f32 %v1390_v54, %v4689_v15  ;;  %v1535_v1 = vadd.f32 1.0, %v3626_v10  ;;  %v1448_v6 = vmin.f32 %v4752_v4, 20.0  ;;  %v1629_v43 = vadd.f32 1.0, %v4746_v55 }
 0x245   : > { %v3628_v39 = vpop.eup %3627  ;;  %3639 = vpow2.f32 %v1489_v42  ;;  %v1392_v32 = vpop.f32.mrf.mxu1  ;;  %v1566_v26 = vmul.f32 %v1534_v24, %v1534_v24  ;;  %v1491_v60 = vmul.f32 1.442695, %v1447_v38 }
 0x246   : > { %v1536_v31 = vadd.f32 1.0, %v3628_v39  ;;  %v1449_v14 = vmin.f32 %v4756_v9, 20.0  ;;  %v4764_v11 = vadd.f32 %v1392_v32, %v4692_v46  ;;  %3641 = vrcp.f32 %v1627_v12 }
 0x247   : > { %v1396_v53 = vpop.f32.mrf.mxu1  ;;  %v1493_v36 = vmul.f32 1.442695, %v1448_v6  ;;  %3643 = vrcp.f32 %v1628_v7  ;;  %v1567_v28 = vmul.f32 %v1535_v1, %v1535_v1  ;;  %v1630_v33 = vadd.f32 1.0, %v1566_v26 }
 0x248   : > { %v1450_v41 = vmin.f32 %v4764_v11, 20.0  ;;  %3645 = vrcp.f32 %v1629_v43  ;;  %v1568_v2 = vmul.f32 %v1536_v31, %v1536_v31  ;;  %v1495_v51 = vmul.f32 1.442695, %v1449_v14 }
 0x249   : > { %v3630_v57 = vpop.eup %3629  ;;  %v1398_v56 = vpop.f32.mrf.mxu1  ;;  %3647 = vpow2.f32 %v1493_v36  ;;  %v1631_v34 = vadd.f32 1.0, %v1567_v28  ;;  %v4771_v35 = vadd.f32 %v1396_v53, %v4689_v15 }
 0x24a   : > { %v3632_v47 = vpop.eup %3631  ;;  %v1538_v45 = vadd.f32 1.0, %v3630_v57  ;;  %v1497_v5 = vmul.f32 1.442695, %v1450_v41  ;;  %v4768_v22 = vadd.f32 %v1398_v56, %v4692_v46  ;;  %v1632_v49 = vadd.f32 1.0, %v1568_v2 }
 0x24b   : > { %v3634_v18 = vpop.eup %3633  ;;  %v1400_v50 = vpop.f32.mrf.mxu1  ;;  %v1537_v17 = vadd.f32 1.0, %v3632_v47  ;;  %v1451_v1 = vmin.f32 %v4771_v35, 20.0  ;;  %v3101_v56 = vadd.f32 -1.0, %v4742_v30  ;;  %v3102_v47 = vadd.f32 -1.0, %v4744_v48 }
 0x24c   : > { %v1539_v27 = vadd.f32 1.0, %v3634_v18  ;;  %3649 = vpow2.f32 %v1497_v5  ;;  %v1570_v25 = vmul.f32 %v1538_v45, %v1538_v45  ;;  %v1452_v10 = vmin.f32 %v4768_v22, 20.0 }
 0x24d   : > { %v1402_v40 = vpop.f32.mrf.mxu1  ;;  %v3636_v13 = vpop.eup %3635  ;;  %3651 = vpow2.f32 %v1491_v60  ;;  %v1569_v54 = vmul.f32 %v1537_v17, %v1537_v17  ;;  %v4775_v24 = vadd.f32 %v1400_v50, %v4689_v15  ;;  %v3103_v50 = vadd.f32 -1.0, %v4746_v55 }
 0x24e   : > { %v1540_v42 = vadd.f32 1.0, %v3636_v13  ;;  %3653 = vpow2.f32 %v1495_v51  ;;  %v1571_v12 = vmul.f32 %v1539_v27, %v1539_v27  ;;  %v1634_v53 = vadd.f32 1.0, %v1570_v25 }
 0x24f   : > { %v1406_v37 = vpop.f32.mrf.mxu1  ;;  %v3638_v23 = vpop.eup %3637  ;;  %3655 = vrcp.f32 %v1630_v33  ;;  %v1501_v31 = vmul.f32 1.442695, %v1452_v10  ;;  %v1633_v38 = vadd.f32 1.0, %v1569_v54  ;;  %v1453_v18 = vmin.f32 %v4775_v24, 20.0 }
 0x250   : > { %3657 = vrcp.f32 %v1631_v34  ;;  %v1541_v7 = vadd.f32 1.0, %v3638_v23  ;;  %v1572_v43 = vmul.f32 %v1540_v42, %v1540_v42  ;;  %v1635_v36 = vadd.f32 1.0, %v1571_v12 }
 0x251   : > { %v1408_v39 = vpop.f32.mrf.mxu1  ;;  %3659 = vrcp.f32 %v1632_v49  ;;  %v1499_v60 = vmul.f32 1.442695, %v1451_v1  ;;  %v3104_v5 = vadd.f32 -1.0, %v1566_v26  ;;  %v3105_v13 = vadd.f32 -1.0, %v1567_v28 }
 0x252   : > { %v3640_v32 = vpop.eup %3639  ;;  %v1573_v45 = vmul.f32 %v1541_v7, %v1541_v7  ;;  %3661 = vpow2.f32 %v1501_v31  ;;  %v1636_v33 = vadd.f32 1.0, %v1572_v43  ;;  %v1503_v48 = vmul.f32 1.442695, %v1453_v18 }
 0x253   : > { %v4778_v6 = vpop.f32.mrf.mxu1  ;;  %v1542_v57 = vadd.f32 1.0, %v3640_v32  ;;  %v3642_v41 = vpop.eup %3641  ;;  %3663 = vrcp.f32 %v1634_v53  ;;  %v4789_v34 = vadd.f32 %v1402_v40, %v4692_v46  ;;  %v3106_v49 = vadd.f32 -1.0, %v1568_v2 }
 0x254   : > { %v3644_v51 = vpop.eup %3643  ;;  %3665 = vrcp.f32 %v1633_v38  ;;  %v1691_v23 = vmul.f32 %v3642_v41, %v3101_v56  ;;  %v4791_v55 = vadd.f32 -1.0, %v1569_v54  ;;  %v1637_v32 = vadd.f32 1.0, %v1573_v45 }
 0x255   : > { %v4780_v14 = vpop.f32.mrf.mxu1  ;;  %v3646_v27 = vpop.eup %3645  ;;  %v1574_v30 = vmul.f32 %v1542_v57, %v1542_v57  ;;  %3667 = vrcp.f32 %v1635_v36  ;;  %v1692_v10 = vmul.f32 %v3644_v51, %v3102_v47  ;;  %v1454_v26 = vmin.f32 %v4789_v34, 20.0 }
 0x256   : > { %v3648_v42 = vpop.eup %3647  ;;  %3669 = vpow2.f32 %v1499_v60  ;;  %v1693_v1 = vmul.f32 %v3646_v27, %v3103_v50  ;;  %v3108_v53 = vadd.f32 -1.0, %v1570_v25  ;;  %v4797_v40 = vadd.f32 %v1406_v37, %v4689_v15 }
 0x257   : > { %v4786_v17 = vpop.f32.mrf.mxu1  ;;  %3671 = vrcp.f32 %v1636_v33  ;;  %v4799_v2 = vadd.f32 -1.0, %v1571_v12  ;;  %v1638_v54 = vadd.f32 1.0, %v1574_v30  ;;  %v1544_v56 = vadd.f32 1.0, %v3648_v42 }
 0x258   : > { %3673 = vpow2.f32 %v1503_v48  ;;  %v1505_v47 = vmul.f32 1.442695, %v1454_v26  ;;  %v1455_v36 = vmin.f32 %v4797_v40, 20.0  ;;  %v4803_v18 = vadd.f32 %v1408_v39, %v4692_v46 }
 0x259   : > { %v4794_v28 = vpop.f32.mrf.mxu1  ;;  %v3650_v7 = vpop.eup %3649  ;;  %v4806_v25 = vmul.f32 %v1691_v23, %v4695_v20  ;;  %v4809_v37 = vmul.f32 %v1692_v10, %v4699_v52  ;;  %v4811_v12 = vadd.f32 -1.0, %v1572_v43  ;;  %3675 = vrcp.f32 %v1637_v32 }
 0x25a   : > { %v3652_v31 = vpop.eup %3651  ;;  %v1546_v38 = vadd.f32 1.0, %v3650_v7  ;;  %v4814_v51 = vmul.f32 %v1693_v1, %v4703_v29  ;;  %v4816_v33 = vadd.f32 -1.0, %v1573_v45  ;;  %3677 = vpow2.f32 %v1505_v47 }
 0x25b   : > { %v3654_v57 = vpop.eup %3653  ;;  %v1420_v50 = vpop.f32.mrf.mxu1  ;;  %v1543_v27 = vadd.f32 1.0, %v3652_v31  ;;  %v1456_v20 = vmin.f32 %v4803_v18, 20.0  ;;  %v4823_v52 = vadd.f32 %v4778_v6, %v4689_v15  ;;  %3679 = vrcp.f32 %v1638_v54 }
 0x25c   : > { %v3656_v41 = vpop.eup %3655  ;;  %v1545_v48 = vadd.f32 1.0, %v3654_v57  ;;  %v4818_v42 = vmul.f32 %v1546_v38, %v1546_v38  ;;  %v1576_v23 = vmul.f32 %v1544_v56, %v1544_v56  ;;  %v1507_v10 = vmul.f32 1.442695, %v1455_v36 }
 0x25d   : > { %v3658_v60 = vpop.eup %3657  ;;  %v1694_v43 = vmul.f32 %v3656_v41, %v3104_v5  ;;  %v4825_v32 = vadd.f32 -1.0, %v1574_v30  ;;  %v1509_v45 = vmul.f32 1.442695, %v1456_v20  ;;  %v1457_v26 = vmin.f32 %v4823_v52, 20.0  ;;  %v1422_v7 = vpop.f32.mrf.mxu1 }
 0x25e   : > { %v3660_v39 = vpop.eup %3659  ;;  %v1695_v29 = vmul.f32 %v3658_v60, %v3105_v13  ;;  %v1755_v31 = vpack.c.bf16 %v4814_v51, %v4806_v25  ;;  %v4830_v57 = vmul.f32 %v1543_v27, %v1543_v27  ;;  %v4834_v6 = vadd.f32 %v4780_v14, %v4692_v46 }
 0x25f   : > { %v3662_v1 = vpop.eup %3661  ;;  %v1696_v38 = vmul.f32 %v3660_v39, %v3106_v49  ;;  %v4836_v54 = vmul.f32 %v1545_v48, %v1545_v48  ;;  %v1642_v13 = vadd.f32 1.0, %v4818_v42  ;;  %3681 = vpow2.f32 %v1509_v45  ;;  %v1426_v51 = vpop.f32.mrf.mxu1 }
 0x260   : > { %v3664_v5 = vpop.eup %3663  ;;  %v1511_v30 = vmul.f32 1.442695, %v1457_v26  ;;  %v1726_v47 = vmul.f32 %v1694_v43, %v4707_v19  ;;  %v1640_v36 = vadd.f32 1.0, %v1576_v23  ;;  %3683 = vpow2.f32 %v1507_v10 }
 0x261   : > { %v3666_v56 = vpop.eup %3665  ;;  %v1458_v49 = vmin.f32 %v4834_v6, 20.0  ;;  %v4842_v25 = vmul.f32 %v1695_v29, %v4711_v3  ;;  %v1548_v14 = vadd.f32 1.0, %v3662_v1  ;;  %v4846_v60 = vadd.f32 %v4786_v17, %v4689_v15 }
 0x262   : > { %v3668_v41 = vpop.eup %3667  ;;  %3685 = vpow2.f32 %v1511_v30  ;;  %v4849_v39 = vmul.f32 %v1696_v38, %v4715_v0  ;;  %v1698_v19 = vmul.f32 %v3664_v5, %v3108_v53  ;;  %v1639_v48 = vadd.f32 1.0, %v4830_v57  ;;  %v1428_v5 = vpop.f32.mrf.mxu1 }
 0x263   : > { %v3670_v27 = vpop.eup %3669  ;;  %v1513_v20 = vmul.f32 1.442695, %v1458_v49  ;;  %v1641_v10 = vadd.f32 1.0, %v4836_v54  ;;  %3687 = vrcp.f32 %v1642_v13  ;;  %v1459_v3 = vmin.f32 %v4846_v60, 20.0 }
 0x264   : > { %v3672_v43 = vpop.eup %3671  ;;  %v4856_v29 = vadd.f32 %v4794_v28, %v4692_v46  ;;  %v1697_v45 = vmul.f32 %v3666_v56, %v4791_v55  ;;  %3689 = vrcp.f32 %v1640_v36  ;;  %v4860_v0 = vadd.f32 %v1420_v50, %v4689_v15 }
 0x265   : > { %v3674_v17 = vpop.eup %3673  ;;  %v1756_v53 = vpack.c.bf16 %v1726_v47, %v4809_v37  ;;  %v4863_v26 = vmul.f32 %v1548_v14, %v1548_v14  ;;  %3691 = vpow2.f32 %v1513_v20  ;;  %v1515_v1 = vmul.f32 1.442695, %v1459_v3 }
 0x266   : > { %v1460_v38 = vmin.f32 %v4856_v29, 20.0  ;;  %v3676_v13 = vpop.eup %3675  ;;  %3693 = vrcp.f32 %v1639_v48  ;;  %v1461_v28 = vmin.f32 %v4860_v0, 20.0  ;;  %v4868_v55 = vadd.f32 %v1422_v7, %v4692_v46 }
 0x267   : > { %2007 = vmatprep.mubr.bf16.mxu0 %v1756_v53  ;;  %v4871_v50 = vadd.f32 %v1426_v51, %v4689_v15  ;;  %v3678_v30 = vpop.eup %3677  ;;  %v1730_v37 = vmul.f32 %v1698_v19, %v4723_v44  ;;  %v4874_v56 = vadd.f32 -1.0, %v1576_v23  ;;  %3695 = vrcp.f32 %v1641_v10  ;;  %v1430_v53 = vpop.f32.mrf.mxu1 }
 0x268   : > { %v1549_v47 = vadd.f32 1.0, %v3674_v17  ;;  %2008 = vmatmul.mubr.bf16.vlgmr.msra.gmra.mxu0 %v1755_v31  ;;  %v1550_v36 = vadd.f32 1.0, %v3678_v30  ;;  %v1517_v49 = vmul.f32 1.442695, %v1460_v38  ;;  %v1519_v14 = vmul.f32 1.442695, %v1461_v28  ;;  %v3680_v20 = vpop.eup %3679 }
 0x269   : > { %v1462_v48 = vmin.f32 %v4868_v55, 20.0  ;;  %v1547_v3 = vadd.f32 1.0, %v3670_v27  ;;  %v1644_v7 = vadd.f32 1.0, %v4863_v26  ;;  %3697 = vpow2.f32 %v1515_v1 }
 0x26a   : > { %v1463_v51 = vmin.f32 %v4871_v50, 20.0  ;;  %v4879_v63 = vmul.f32 %v1550_v36, %v1550_v36  ;;  %3699 = vpow2.f32 %v1517_v49  ;;  %v4882_v23 = vadd.f32 %v1428_v5, %v4692_v46 }
 0x26b   : > { %v1521_v44 = vmul.f32 1.442695, %v1462_v48  ;;  %v1729_v31 = vmul.f32 %v1697_v45, %v4719_v16  ;;  %v4886_v19 = vmul.f32 %v3668_v41, %v4799_v2  ;;  %v4888_v10 = vmul.f32 %v1549_v47, %v1549_v47  ;;  %v1432_v45 = vpop.f32.mrf.mxu1 }
 0x26c   : > { %3701 = vpow2.f32 %v1519_v14  ;;  %v3682_v27 = vpop.eup %3681  ;;  %v1700_v17 = vmul.f32 %v3672_v43, %v4811_v12  ;;  %v1702_v1 = vmul.f32 %v3680_v20, %v4825_v32  ;;  %v1646_v38 = vadd.f32 1.0, %v4879_v63 }
 0x26d   : > { %3703 = vpow2.f32 %v1521_v44  ;;  %v3684_v28 = vpop.eup %3683  ;;  %v1552_v5 = vadd.f32 1.0, %v3682_v27  ;;  %v1523_v30 = vmul.f32 1.442695, %v1463_v51  ;;  %v1464_v16 = vmin.f32 %v4882_v23, 20.0 }
 0x26e   : > { %3705 = vrcp.f32 %v1644_v7  ;;  %v4894_v41 = vmul.f32 %v1547_v3, %v1547_v3  ;;  %v4897_v47 = vadd.f32 %v1430_v53, %v4689_v15  ;;  %v1758_v12 = vpack.c.bf16 %v1730_v37, %v4849_v39 }
 0x26f   : > { %v3686_v2 = vpop.eup %3685  ;;  %3707 = vrcp.f32 %v1646_v38  ;;  %v3116_v32 = vadd.f32 -1.0, %v4818_v42  ;;  %v1645_v43 = vadd.f32 1.0, %v4888_v10  ;;  %v4902_v36 = vmul.f32 %v1552_v5, %v1552_v5 }
 0x270   : > { %v1553_v49 = vadd.f32 1.0, %v3686_v2  ;;  %v3688_v14 = vpop.eup %3687  ;;  %v1732_v48 = vmul.f32 %v1700_v17, %v4731_v21  ;;  %v1525_v20 = vmul.f32 1.442695, %v1464_v16  ;;  %v1465_v3 = vmin.f32 %v4897_v47, 20.0  ;;  %2017 = vmatprep.mubr.bf16.mxu0 %v1758_v12 }
 0x271   : > { %v4907_v7 = vadd.f32 %v1432_v45, %v4692_v46  ;;  %v3690_v15 = vpop.eup %3689  ;;  %v1734_v39 = vmul.f32 %v1702_v1, %v4739_v61  ;;  %v1551_v37 = vadd.f32 1.0, %v3684_v28  ;;  %v1648_v42 = vadd.f32 1.0, %v4902_v36 }
 0x272   : > { %3709 = vpow2.f32 %v1523_v30  ;;  %v3692_v51 = vpop.eup %3691  ;;  %v1701_v53 = vmul.f32 %v3676_v13, %v4816_v33  ;;  %v1643_v44 = vadd.f32 1.0, %v4894_v41  ;;  %v1527_v21 = vmul.f32 1.442695, %v1465_v3 }
 0x273   : > { %3711 = vpow2.f32 %v1525_v20  ;;  %v3694_v27 = vpop.eup %3693  ;;  %v1706_v17 = vmul.f32 %v3688_v14, %v3116_v32  ;;  %v4913_v38 = vmul.f32 %v1553_v49, %v1553_v49  ;;  %v1554_v46 = vadd.f32 1.0, %v3692_v51 }
 0x274   : > { %3713 = vrcp.f32 %v1645_v43  ;;  %v3696_v5 = vpop.eup %3695  ;;  %v1704_v61 = vmul.f32 %v3690_v15, %v4874_v56  ;;  %v1466_v1 = vmin.f32 %v4907_v7, 20.0  ;;  %v1757_v28 = vpack.c.bf16 %v1729_v31, %v4842_v25 }
 0x275   : > { %3715 = vpow2.f32 %v1527_v21  ;;  %v4918_v30 = vmul.f32 %v1551_v37, %v1551_v37  ;;  %v4920_v33 = vmul.f32 %v1554_v46, %v1554_v46  ;;  %v1760_v13 = vpack.c.bf16 %v1734_v39, %v1732_v48 }
 0x276   : > { %3717 = vrcp.f32 %v1648_v42  ;;  %v3698_v16 = vpop.eup %3697  ;;  %v3113_v45 = vadd.f32 -1.0, %v4830_v57  ;;  %v1529_v2 = vmul.f32 1.442695, %v1466_v1  ;;  %2018 = vmatmul.mubr.bf16.gmra.mxu0 %v1757_v28  ;;  %v3115_v56 = vadd.f32 -1.0, %v4836_v54 }
 0x277   : > { %3719 = vrcp.f32 %v1643_v44  ;;  %v3700_v12 = vpop.eup %3699  ;;  %v1738_v32 = vmul.f32 %v1706_v17, %v4764_v11  ;;  %v1649_v43 = vadd.f32 1.0, %v4913_v38  ;;  %v1650_v25 = vadd.f32 1.0, %v4920_v33  ;;  %2027 = vmatprep.mubr.bf16.mxu0 %v1760_v13 }
 0x278   : > { %v1731_v49 = vmul.f32 %v4886_v19, %v4727_v58  ;;  %v1733_v14 = vmul.f32 %v1701_v53, %v4735_v8  ;;  %v1556_v57 = vadd.f32 1.0, %v3700_v12  ;;  %3721 = vpow2.f32 %v1529_v2 }
 0x279   : > { %v3702_v31 = vpop.eup %3701  ;;  %v1736_v20 = vmul.f32 %v1704_v61, %v4752_v4  ;;  %v3120_v54 = vadd.f32 -1.0, %v4879_v63  ;;  %v1647_v11 = vadd.f32 1.0, %v4918_v30  ;;  %3723 = vrcp.f32 %v1650_v25 }
 0x27a   : > { %v3704_v48 = vpop.eup %3703  ;;  %v1555_v15 = vadd.f32 1.0, %v3698_v16  ;;  %v4933_v39 = vmul.f32 %v1556_v57, %v1556_v57  ;;  %v1557_v37 = vadd.f32 1.0, %v3702_v31  ;;  %v1705_v58 = vmul.f32 %v3696_v5, %v3115_v56 }
 0x27b   : > { %v3706_v3 = vpop.eup %3705  ;;  %v1558_v42 = vadd.f32 1.0, %v3704_v48  ;;  %v3118_v8 = vadd.f32 -1.0, %v4863_v26  ;;  %3725 = vrcp.f32 %v1649_v43  ;;  %v1762_v19 = vpack.c.bf16 %v1738_v32, %v1736_v20 }
 0x27c   : > { %v3708_v51 = vpop.eup %3707  ;;  %v1652_v4 = vadd.f32 1.0, %v4933_v39  ;;  %v4937_v44 = vmul.f32 %v1557_v37, %v1557_v37  ;;  %v1759_v63 = vpack.c.bf16 %v1733_v14, %v1731_v49  ;;  %v1703_v21 = vmul.f32 %v3694_v27, %v3113_v45 }
 0x27d   : > { %v1710_v53 = vmul.f32 %v3708_v51, %v3120_v54  ;;  %v1708_v17 = vmul.f32 %v3706_v3, %v3118_v8  ;;  %3727 = vrcp.f32 %v1647_v11  ;;  %v4939_v46 = vmul.f32 %v1558_v42, %v1558_v42 }
 0x27e   : > { %v4941_v1 = vmul.f32 %v1555_v15, %v1555_v15  ;;  %3729 = vrcp.f32 %v1652_v4  ;;  %2028 = vmatmul.mubr.bf16.gmra.mxu0 %v1759_v63  ;;  %v1737_v26 = vmul.f32 %v1705_v58, %v4756_v9  ;;  %v1653_v27 = vadd.f32 1.0, %v4937_v44 }
 0x27f   : > { %v3710_v61 = vpop.eup %3709  ;;  %v1742_v28 = vmul.f32 %v1710_v53, %v4789_v34  ;;  %v1654_v13 = vadd.f32 1.0, %v4939_v46  ;;  %2037 = vmatprep.mubr.bf16.mxu0 %v1762_v19  ;;  %v1735_v12 = vmul.f32 %v1703_v21, %v4749_v59  ;;  %v1740_v56 = vmul.f32 %v1708_v17, %v4768_v22 }
 0x280   : > { %v3712_v5 = vpop.eup %3711  ;;  %v3119_v32 = vadd.f32 -1.0, %v4888_v10  ;;  %v1651_v9 = vadd.f32 1.0, %v4941_v1  ;;  %v1559_v25 = vadd.f32 1.0, %v3710_v61  ;;  %v3117_v14 = vadd.f32 -1.0, %v4894_v41 }
 0x281   : > { %v3714_v16 = vpop.eup %3713  ;;  %v1560_v45 = vadd.f32 1.0, %v3712_v5  ;;  %3731 = vrcp.f32 %v1654_v13  ;;  %v3122_v57 = vadd.f32 -1.0, %v4902_v36  ;;  %v1761_v48 = vpack.c.bf16 %v1737_v26, %v1735_v12 }
 0x282   : > { %v3716_v2 = vpop.eup %3715  ;;  %v1764_v20 = vpack.c.bf16 %v1742_v28, %v1740_v56  ;;  %v1709_v59 = vmul.f32 %v3714_v16, %v3119_v32  ;;  %3733 = vrcp.f32 %v1653_v27  ;;  %v3124_v3 = vadd.f32 -1.0, %v4920_v33 }
 0x283   : > { %v3718_v43 = vpop.eup %3717  ;;  %v4951_v34 = vmul.f32 %v1560_v45, %v1560_v45  ;;  %v1561_v31 = vadd.f32 1.0, %v3716_v2  ;;  %3735 = vrcp.f32 %v1651_v9  ;;  %v1591_v42 = vmul.f32 %v1559_v25, %v1559_v25 }
 0x284   : > { %v3720_v49 = vpop.eup %3719  ;;  %v1712_v11 = vmul.f32 %v3718_v43, %v3122_v57  ;;  %v1741_v8 = vmul.f32 %v1709_v59, %v4775_v24  ;;  %v3123_v21 = vadd.f32 -1.0, %v4913_v38  ;;  %v3126_v26 = vadd.f32 -1.0, %v4933_v39 }
 0x285   : > { %v1656_v22 = vadd.f32 1.0, %v4951_v34  ;;  %v1593_v10 = vmul.f32 %v1561_v31, %v1561_v31  ;;  %v3722_v54 = vpop.eup %3721  ;;  %v1707_v37 = vmul.f32 %v3720_v49, %v3117_v14  ;;  %v1655_v17 = vadd.f32 1.0, %v1591_v42 }
 0x286   : > { %v3724_v15 = vpop.eup %3723  ;;  %v1562_v51 = vadd.f32 1.0, %v3722_v54  ;;  %2038 = vmatmul.mubr.bf16.gmra.mxu0 %v1761_v48  ;;  %v1744_v53 = vmul.f32 %v1712_v11, %v4803_v18  ;;  %v3121_v24 = vadd.f32 -1.0, %v4918_v30  ;;  %v3127_v56 = vadd.f32 -1.0, %v4937_v44 }
 0x287   : > { %v1714_v41 = vmul.f32 %v3724_v15, %v3124_v3  ;;  %v1657_v58 = vadd.f32 1.0, %v1593_v10  ;;  %2047 = vmatprep.mubr.bf16.mxu0 %v1764_v20  ;;  %3737 = vrcp.f32 %v1656_v22  ;;  %v1739_v33 = vmul.f32 %v1707_v37, %v4771_v35 }
 0x288   : > { %v3726_v36 = vpop.eup %3725  ;;  %v1594_v19 = vmul.f32 %v1562_v51, %v1562_v51  ;;  %v3130_v14 = vadd.f32 -1.0, %v4951_v34  ;;  %v3131_v48 = vadd.f32 -1.0, %v1593_v10  ;;  %v3129_v59 = vadd.f32 -1.0, %v1591_v42  ;;  %v1803_v10 = vld [vmem:[%s537_s28] sm:$0x3]  ;;  %s5516_s28 = sld [smem:[#allocation27_spill]] (%p4218_p12) }
 0x289   : > { %v1746_v4 = vmul.f32 %v1714_v41, %v4834_v6  ;;  %3739 = vrcp.f32 %v1657_v58  ;;  %v1713_v13 = vmul.f32 %v3726_v36, %v3123_v21  ;;  %v1763_v16 = vpack.c.bf16 %v1741_v8, %v1739_v33 }
 0x28a   : > { %v3728_v63 = vpop.eup %3727  ;;  %v1658_v61 = vadd.f32 1.0, %v1594_v19  ;;  %v3128_v6 = vadd.f32 -1.0, %v4939_v46  ;;  %v3125_v46 = vadd.f32 -1.0, %v4941_v1  ;;  %v3132_v57 = vadd.f32 -1.0, %v1594_v19 }
 0x28b   : > { %v3730_v5 = vpop.eup %3729  ;;  %v1766_v28 = vpack.c.bf16 %v1746_v4, %v1744_v53  ;;  %v1711_v45 = vmul.f32 %v3728_v63, %v3121_v24  ;;  %v1745_v38 = vmul.f32 %v1713_v13, %v4823_v52 }
 0x28c   : > { %3741 = vrcp.f32 %v1658_v61  ;;  %v1716_v18 = vmul.f32 %v3730_v5, %v3126_v26 }
 0x28d   : > { %3743 = vrcp.f32 %v1655_v17  ;;  %v1743_v30 = vmul.f32 %v1711_v45, %v4797_v40 }
 0x28e   : > { %v3732_v27 = vpop.eup %3731  ;;  %2048 = vmatmul.mubr.bf16.gmra.mxu0 %v1763_v16  ;;  %v1748_v39 = vmul.f32 %v1716_v18, %v4856_v29  ;;  %s5342_s22 = scalar_lea.vmem (%p4218_p12), %s5516_s28, %s3202_s26  }
 0x28f   : > { %v1718_v35 = vmul.f32 %v3732_v27, %v3128_v6  ;;  %2057 = vmatprep.mubr.bf16.mxu0 %v1766_v28  ;;  %v3734_v2 = vpop.eup %3733  ;;  %v1765_v25 = vpack.c.bf16 %v1745_v38, %v1743_v30 }
 0x290   : > { %v3736_v32 = vpop.eup %3735  ;;  %v1717_v9 = vmul.f32 %v3734_v2, %v3127_v56 }
 0x291   : > { %v1750_v12 = vmul.f32 %v1718_v35, %v4868_v55  ;;  %v1715_v49 = vmul.f32 %v3736_v32, %v3125_v46 }
 0x292   : > { %v1749_v29 = vmul.f32 %v1717_v9, %v4860_v0 }
 0x293   : > { %v1768_v43 = vpack.c.bf16 %v1750_v12, %v1748_v39  ;;  %v1747_v44 = vmul.f32 %v1715_v49, %v4846_v60 }
 0x294   : > { %v3738_v31 = vpop.eup %3737 }
 0x295   : > { %v1720_v55 = vmul.f32 %v3738_v31, %v3130_v14  ;;  %v1767_v11 = vpack.c.bf16 %v1749_v29, %v1747_v44 }
 0x296   : > { %2058 = vmatmul.mubr.bf16.gmra.mxu0 %v1765_v25  ;;  %v3740_v52 = vpop.eup %3739 }
 0x297   : > { %2067 = vmatprep.mubr.bf16.mxu0 %v1768_v43  ;;  %v1752_v22 = vmul.f32 %v1720_v55, %v4882_v23  ;;  %v1721_v54 = vmul.f32 %v3740_v52, %v3131_v48  ;;  %v4983_v23 = vrot.slane %v1803_v10, %v5511_v62 }
 0x299   : > { %v3742_v40 = vpop.eup %3741  ;;  %v1753_v0 = vmul.f32 %v1721_v54, %v4897_v47 }
 0x29a   : > { %v1722_v20 = vmul.f32 %v3742_v40, %v3132_v57  ;;  %v3744_v1 = vpop.eup %3743 }
 0x29b   : > { %v1719_v3 = vmul.f32 %v3744_v1, %v3129_v59 }
 0x29c   : > { %v1754_v34 = vmul.f32 %v1722_v20, %v4907_v7  ;;  %v5513_v7 = vld [vmem:[#allocation18_spill] sm:$0xff] }
 0x29d   : > { %v1751_v37 = vmul.f32 %v1719_v3, %v4871_v50  ;;  %v4986_v42 = vrot.slane %v1803_v10, %v5513_v7 }
 0x29e   : > { %2068 = vmatmul.mubr.bf16.gmra.mxu0 %v1767_v11  ;;  %v1770_v15 = vpack.c.bf16 %v1754_v34, %v1752_v22 }
 0x29f   : > { %v1769_v60 = vpack.c.bf16 %v1753_v0, %v1751_v37 }
 0x2a0   : > { %2077 = vmatprep.mubr.bf16.mxu0 %v1770_v15 }
 0x2a6   : > { %2078 = vmatmul.mubr.bf16.gmra.mxu0 %v1769_v60 }
 0x328   : > { %v2009_v51 = vpop.f32.mrf.mxu0 }
 0x329   : > { %v4989_v41 = vadd.f32 %v2009_v51, %v4983_v23 }
 0x32a   : > { %v2011_v47 = vpop.f32.mrf.mxu0 }
 0x32b   : > { %v2088_v50 = vmin.f32 %v4989_v41, 20.0  ;;  %v4993_v58 = vadd.f32 %v2011_v47, %v4986_v42 }
 0x32c   : > { %v2013_v36 = vpop.f32.mrf.mxu0 }
 0x32d   : > { %v2120_v8 = vmul.f32 1.442695, %v2088_v50  ;;  %v2089_v19 = vmin.f32 %v4993_v58, 20.0  ;;  %v4997_v53 = vadd.f32 %v2013_v36, %v4983_v23 }
 0x32e   : > { %v2015_v4 = vpop.f32.mrf.mxu0 }
 0x32f   : > { %3745 = vpow2.f32 %v2120_v8  ;;  %v2122_v63 = vmul.f32 1.442695, %v2089_v19  ;;  %v2090_v33 = vmin.f32 %v4997_v53, 20.0  ;;  %v5001_v21 = vadd.f32 %v2015_v4, %v4986_v42 }
 0x331   : > { %3747 = vpow2.f32 %v2122_v63  ;;  %v2124_v17 = vmul.f32 1.442695, %v2090_v33  ;;  %v2091_v61 = vmin.f32 %v5001_v21, 20.0 }
 0x333   : > { %3749 = vpow2.f32 %v2124_v17  ;;  %v2126_v5 = vmul.f32 1.442695, %v2091_v61 }
 0x335   : > { %3751 = vpow2.f32 %v2126_v5 }
 0x336   : > { %v2019_v26 = vpop.f32.mrf.mxu0 }
 0x337   : > { %v5005_v28 = vadd.f32 %v2019_v26, %v4983_v23 }
 0x338   : > { %v2021_v24 = vpop.f32.mrf.mxu0 }
 0x339   : > { %v2092_v13 = vmin.f32 %v5005_v28, 20.0  ;;  %v5009_v16 = vadd.f32 %v2021_v24, %v4986_v42 }
 0x33a   : > { %v2023_v18 = vpop.f32.mrf.mxu0 }
 0x33b   : > { %v2128_v27 = vmul.f32 1.442695, %v2092_v13  ;;  %v2093_v45 = vmin.f32 %v5009_v16, 20.0  ;;  %v5013_v35 = vadd.f32 %v2023_v18, %v4983_v23  ;;  %v2424_v13 = vld [vmem:[%s541_s25] sm:$0x3] }
 0x33c   : > { %v3746_v6 = vpop.eup %3745  ;;  %v2025_v2 = vpop.f32.mrf.mxu0 }
 0x33d   : > { %v2184_v38 = vadd.f32 1.0, %v3746_v6  ;;  %3753 = vpow2.f32 %v2128_v27  ;;  %v2130_v12 = vmul.f32 1.442695, %v2093_v45  ;;  %v2094_v30 = vmin.f32 %v5013_v35, 20.0 }
 0x33e   : > { %v3748_v39 = vpop.eup %3747  ;;  %v5017_v56 = vadd.f32 %v2025_v2, %v4986_v42  ;;  %v2029_v46 = vpop.f32.mrf.mxu0 }
 0x33f   : > { %v5019_v32 = vmul.f32 %v2184_v38, %v2184_v38  ;;  %v2185_v43 = vadd.f32 1.0, %v3748_v39  ;;  %3755 = vpow2.f32 %v2130_v12  ;;  %v2132_v25 = vmul.f32 1.442695, %v2094_v30 }
 0x340   : > { %v3750_v9 = vpop.eup %3749  ;;  %v2095_v31 = vmin.f32 %v5017_v56, 20.0  ;;  %v5023_v49 = vadd.f32 %v2029_v46, %v4983_v23  ;;  %v2031_v55 = vpop.f32.mrf.mxu0  ;;  %v5065_v46 = vrot.slane %v2424_v13, %v5511_v62 }
 0x341   : > { %v2280_v14 = vadd.f32 1.0, %v5019_v32  ;;  %v5026_v52 = vmul.f32 %v2185_v43, %v2185_v43  ;;  %v2186_v29 = vadd.f32 1.0, %v3750_v9  ;;  %3757 = vpow2.f32 %v2132_v25 }
 0x342   : > { %v3752_v57 = vpop.eup %3751  ;;  %v2134_v40 = vmul.f32 1.442695, %v2095_v31  ;;  %v2096_v44 = vmin.f32 %v5023_v49, 20.0  ;;  %v5030_v48 = vadd.f32 %v2031_v55, %v4986_v42  ;;  %v2033_v59 = vpop.f32.mrf.mxu0 }
 0x343   : > { %3759 = vrcp.f32 %v2280_v14  ;;  %v2281_v20 = vadd.f32 1.0, %v5026_v52  ;;  %v5033_v1 = vmul.f32 %v2186_v29, %v2186_v29  ;;  %v2187_v22 = vadd.f32 1.0, %v3752_v57 }
 0x344   : > { %3761 = vpow2.f32 %v2134_v40  ;;  %v2136_v54 = vmul.f32 1.442695, %v2096_v44  ;;  %v2097_v34 = vmin.f32 %v5030_v48, 20.0  ;;  %v5038_v3 = vadd.f32 %v2033_v59, %v4983_v23  ;;  %v2035_v15 = vpop.f32.mrf.mxu0 }
 0x345   : > { %3763 = vrcp.f32 %v2281_v20  ;;  %v2282_v11 = vadd.f32 1.0, %v5033_v1  ;;  %v2219_v0 = vmul.f32 %v2187_v22, %v2187_v22  ;;  %v5041_v60 = vadd.f32 %v2035_v15, %v4986_v42 }
 0x346   : > { %3765 = vpow2.f32 %v2136_v54  ;;  %v2138_v37 = vmul.f32 1.442695, %v2097_v34  ;;  %v2098_v10 = vmin.f32 %v5038_v3, 20.0  ;;  %v2039_v51 = vpop.f32.mrf.mxu0  ;;  %v5068_v29 = vrot.slane %v2424_v13, %v5513_v7 }
 0x347   : > { %3767 = vrcp.f32 %v2282_v11  ;;  %v2283_v47 = vadd.f32 1.0, %v2219_v0  ;;  %v2099_v50 = vmin.f32 %v5041_v60, 20.0  ;;  %v5046_v8 = vadd.f32 %v2039_v51, %v4983_v23 }
 0x348   : > { %3769 = vpow2.f32 %v2138_v37  ;;  %v2140_v36 = vmul.f32 1.442695, %v2098_v10  ;;  %v2041_v19 = vpop.f32.mrf.mxu0  ;;  %v3165_v57 = vadd.f32 -1.0, %v5019_v32  ;;  %v3166_v22 = vadd.f32 -1.0, %v5026_v52 }
 0x349   : > { %3771 = vrcp.f32 %v2283_v47  ;;  %v2142_v4 = vmul.f32 1.442695, %v2099_v50  ;;  %v5053_v63 = vadd.f32 %v2041_v19, %v4986_v42  ;;  %v2100_v17 = vmin.f32 %v5046_v8, 20.0 }
 0x34a   : > { %v3754_v33 = vpop.eup %3753  ;;  %3773 = vpow2.f32 %v2140_v36  ;;  %v2043_v61 = vpop.f32.mrf.mxu0  ;;  %v3167_v11 = vadd.f32 -1.0, %v5033_v1  ;;  %v3168_v15 = vadd.f32 -1.0, %v2219_v0 }
 0x34b   : > { %v2188_v5 = vadd.f32 1.0, %v3754_v33  ;;  %3775 = vpow2.f32 %v2142_v4  ;;  %v2101_v26 = vmin.f32 %v5053_v63, 20.0  ;;  %v5058_v24 = vadd.f32 %v2043_v61, %v4983_v23 }
 0x34c   : > { %v3756_v18 = vpop.eup %3755  ;;  %v2144_v6 = vmul.f32 1.442695, %v2100_v17  ;;  %v2045_v27 = vpop.f32.mrf.mxu0 }
 0x34d   : > { %v2220_v45 = vmul.f32 %v2188_v5, %v2188_v5  ;;  %v2189_v38 = vadd.f32 1.0, %v3756_v18  ;;  %v2146_v2 = vmul.f32 1.442695, %v2101_v26  ;;  %v2102_v39 = vmin.f32 %v5058_v24, 20.0 }
 0x34e   : > { %v3758_v12 = vpop.eup %3757  ;;  %3777 = vpow2.f32 %v2144_v6  ;;  %v5062_v30 = vadd.f32 %v2045_v27, %v4986_v42  ;;  %v2049_v43 = vpop.f32.mrf.mxu0 }
 0x34f   : > { %v2284_v25 = vadd.f32 1.0, %v2220_v45  ;;  %v2221_v31 = vmul.f32 %v2189_v38, %v2189_v38  ;;  %v2190_v14 = vadd.f32 1.0, %v3758_v12  ;;  %3779 = vpow2.f32 %v2146_v2 }
 0x350   : > { %v3760_v9 = vpop.eup %3759  ;;  %v2148_v40 = vmul.f32 1.442695, %v2102_v39  ;;  %v2103_v44 = vmin.f32 %v5062_v30, 20.0  ;;  %v2051_v20 = vpop.f32.mrf.mxu0  ;;  %v5075_v1 = vadd.f32 %v2049_v43, %v4983_v23  ;;  %v3169_v5 = vadd.f32 -1.0, %v2220_v45 }
 0x351   : > { %v3762_v55 = vpop.eup %3761  ;;  %3781 = vrcp.f32 %v2284_v25  ;;  %v2285_v62 = vadd.f32 1.0, %v2221_v31  ;;  %v2222_v54 = vmul.f32 %v2190_v14, %v2190_v14  ;;  %v2344_v32 = vmul.f32 %v3760_v9, %v3165_v57 }
 0x352   : > { %v3764_v59 = vpop.eup %3763  ;;  %v2191_v7 = vadd.f32 1.0, %v3762_v55  ;;  %3783 = vpow2.f32 %v2148_v40  ;;  %v2053_v37 = vpop.f32.mrf.mxu0  ;;  %v2150_v52 = vmul.f32 1.442695, %v2103_v44  ;;  %v5077_v26 = vadd.f32 -1.0, %v2221_v31 }
 0x353   : > { %v3766_v34 = vpop.eup %3765  ;;  %v2345_v51 = vmul.f32 %v3764_v59, %v3166_v22  ;;  %v2286_v47 = vadd.f32 1.0, %v2222_v54  ;;  %3785 = vrcp.f32 %v2285_v62  ;;  %v2376_v27 = vmul.f32 %v2344_v32, %v4989_v41 }
 0x354   : > { %v3768_v10 = vpop.eup %3767  ;;  %v2192_v50 = vadd.f32 1.0, %v3766_v34  ;;  %v2223_v4 = vmul.f32 %v2191_v7, %v2191_v7  ;;  %v2055_v33 = vpop.f32.mrf.mxu0  ;;  %v3171_v38 = vadd.f32 -1.0, %v2222_v54  ;;  %v2104_v43 = vmin.f32 %v5075_v1, 20.0 }
 0x355   : > { %v3770_v36 = vpop.eup %3769  ;;  %v2346_v19 = vmul.f32 %v3768_v10, %v3167_v11  ;;  %3787 = vrcp.f32 %v2286_v47  ;;  %v2377_v9 = vmul.f32 %v2345_v51, %v4993_v58  ;;  %v5086_v44 = vadd.f32 %v2051_v20, %v4986_v42 }
 0x356   : > { %v2224_v17 = vmul.f32 %v2192_v50, %v2192_v50  ;;  %v2193_v61 = vadd.f32 1.0, %v3770_v36  ;;  %v3772_v0 = vpop.eup %3771  ;;  %v2287_v13 = vadd.f32 1.0, %v2223_v4  ;;  %3789 = vpow2.f32 %v2150_v52  ;;  %v2059_v18 = vpop.f32.mrf.mxu0 }
 0x357   : > { %v3774_v6 = vpop.eup %3773  ;;  %v2378_v45 = vmul.f32 %v2346_v19, %v4997_v53  ;;  %v2347_v31 = vmul.f32 %v3772_v0, %v3168_v15  ;;  %v2152_v41 = vmul.f32 1.442695, %v2104_v43  ;;  %v3172_v58 = vadd.f32 -1.0, %v2223_v4 }
 0x358   : > { %v2288_v2 = vadd.f32 1.0, %v2224_v17  ;;  %v2225_v39 = vmul.f32 %v2193_v61, %v2193_v61  ;;  %v3776_v12 = vpop.eup %3775  ;;  %3791 = vrcp.f32 %v2287_v13  ;;  %v2194_v25 = vadd.f32 1.0, %v3774_v6  ;;  %v5082_v14 = vpop.f32.mrf.mxu0 }
 0x359   : > { %v2195_v40 = vadd.f32 1.0, %v3776_v12  ;;  %v5088_v62 = vadd.f32 -1.0, %v2224_v17  ;;  %v5091_v54 = vadd.f32 %v2053_v37, %v4983_v23  ;;  %v5094_v34 = vadd.f32 %v2055_v33, %v4986_v42 }
 0x35a   : > { %3793 = vrcp.f32 %v2288_v2  ;;  %v2289_v55 = vadd.f32 1.0, %v2225_v39  ;;  %v2226_v57 = vmul.f32 %v2194_v25, %v2194_v25  ;;  %v2063_v59 = vpop.f32.mrf.mxu0  ;;  %v2379_v10 = vmul.f32 %v2347_v31, %v5001_v21 }
 0x35b   : > { %v3778_v22 = vpop.eup %3777  ;;  %v2227_v11 = vmul.f32 %v2195_v40, %v2195_v40  ;;  %v2105_v20 = vmin.f32 %v5086_v44, 20.0  ;;  %v2106_v32 = vmin.f32 %v5091_v54, 20.0  ;;  %v5101_v37 = vpack.c.bf16 %v2378_v45, %v2376_v27 }
 0x35c   : > { %3795 = vrcp.f32 %v2289_v55  ;;  %v2290_v53 = vadd.f32 1.0, %v2226_v57  ;;  %v2196_v15 = vadd.f32 1.0, %v3778_v22  ;;  %v3780_v7 = vpop.eup %3779  ;;  %v5099_v51 = vpop.f32.mrf.mxu0  ;;  %v5103_v4 = vadd.f32 -1.0, %v2225_v39 }
 0x35d   : > { %3797 = vpow2.f32 %v2152_v41  ;;  %v2291_v50 = vadd.f32 1.0, %v2227_v11  ;;  %v2197_v52 = vadd.f32 1.0, %v3780_v7  ;;  %v2154_v33 = vmul.f32 1.442695, %v2105_v20 }
 0x35e   : > { %v3782_v47 = vpop.eup %3781  ;;  %3799 = vrcp.f32 %v2290_v53  ;;  %v2228_v36 = vmul.f32 %v2196_v15, %v2196_v15  ;;  %v2107_v21 = vmin.f32 %v5094_v34, 20.0  ;;  %v2156_v0 = vmul.f32 1.442695, %v2106_v32  ;;  %v2069_v12 = vpop.f32.mrf.mxu0 }
 0x35f   : > { %v3784_v19 = vpop.eup %3783  ;;  %3801 = vrcp.f32 %v2291_v50  ;;  %v5106_v6 = vpack.c.bf16 %v2379_v10, %v2377_v9  ;;  %v3175_v2 = vadd.f32 -1.0, %v2226_v57  ;;  %v2229_v27 = vmul.f32 %v2197_v52, %v2197_v52 }
 0x360   : > { %v2292_v17 = vadd.f32 1.0, %v2228_v36  ;;  %v2198_v61 = vadd.f32 1.0, %v3784_v19  ;;  %v3786_v13 = vpop.eup %3785  ;;  %3803 = vpow2.f32 %v2154_v33  ;;  %v2348_v43 = vmul.f32 %v3782_v47, %v3169_v5 }
 0x361   : > { %v3176_v45 = vadd.f32 -1.0, %v2227_v11  ;;  %v5109_v31 = vadd.f32 %v2059_v18, %v4983_v23  ;;  %v2293_v41 = vadd.f32 1.0, %v2229_v27  ;;  %v2158_v22 = vmul.f32 1.442695, %v2107_v21  ;;  %v2071_v11 = vpop.f32.mrf.mxu0 }
 0x362   : > { %v3788_v25 = vpop.eup %3787  ;;  %v2230_v39 = vmul.f32 %v2198_v61, %v2198_v61  ;;  %3805 = vrcp.f32 %v2292_v17  ;;  %v2349_v53 = vmul.f32 %v3786_v13, %v5077_v26  ;;  %v5116_v18 = vadd.f32 %v5082_v14, %v4986_v42 }
 0x363   : > { %v3790_v55 = vpop.eup %3789  ;;  %v2350_v40 = vmul.f32 %v3788_v25, %v3171_v38  ;;  %3807 = vpow2.f32 %v2156_v0  ;;  %v2108_v5 = vmin.f32 %v5109_v31, 20.0  ;;  %v5119_v26 = vadd.f32 %v2063_v59, %v4983_v23 }
 0x364   : > { %v2294_v9 = vadd.f32 1.0, %v2230_v39  ;;  %v2199_v15 = vadd.f32 1.0, %v3790_v55  ;;  %3809 = vrcp.f32 %v2293_v41  ;;  %v2380_v32 = vmul.f32 %v2348_v43, %v5005_v28  ;;  %v2073_v28 = vpop.f32.mrf.mxu0 }
 0x365   : > { %v3792_v57 = vpop.eup %3791  ;;  %v2382_v7 = vmul.f32 %v2350_v40, %v5013_v35  ;;  %v5122_v47 = vadd.f32 -1.0, %v2228_v36  ;;  %v2160_v35 = vmul.f32 1.442695, %v2108_v5  ;;  %v2381_v50 = vmul.f32 %v2349_v53, %v5009_v16 }
 0x366   : > { %v2351_v10 = vmul.f32 %v3792_v57, %v3172_v58  ;;  %3811 = vrcp.f32 %v2294_v9  ;;  %v2231_v20 = vmul.f32 %v2199_v15, %v2199_v15  ;;  %v5125_v19 = vadd.f32 -1.0, %v2229_v27 }
 0x367   : > { %v3794_v38 = vpop.eup %3793  ;;  %3813 = vpow2.f32 %v2158_v22  ;;  %v2109_v52 = vmin.f32 %v5116_v18, 20.0  ;;  %v5128_v58 = vpack.c.bf16 %v2382_v7, %v2380_v32  ;;  %v5130_v21 = vadd.f32 -1.0, %v2230_v39  ;;  %v2075_v22 = vpop.f32.mrf.mxu0 }
 0x368   : > { %v2295_v14 = vadd.f32 1.0, %v2231_v20  ;;  %3815 = vpow2.f32 %v2160_v35  ;;  %v2110_v59 = vmin.f32 %v5119_v26, 20.0  ;;  %v2383_v17 = vmul.f32 %v2351_v10, %v5017_v56 }
 0x369   : > { %v3796_v33 = vpop.eup %3795  ;;  %v2352_v61 = vmul.f32 %v3794_v38, %v5088_v62  ;;  %v2162_v16 = vmul.f32 1.442695, %v2109_v52  ;;  %v5137_v0 = vadd.f32 %v5099_v51, %v4986_v42  ;;  %v5140_v43 = vadd.f32 %v2069_v12, %v4983_v23 }
 0x36a   : > { %v3798_v36 = vpop.eup %3797  ;;  %3817 = vrcp.f32 %v2295_v14  ;;  %v2164_v25 = vmul.f32 1.442695, %v2110_v59  ;;  %v5144_v56 = vadd.f32 %v2071_v11, %v4986_v42  ;;  %v5148_v41 = vadd.f32 %v2073_v28, %v4983_v23 }
 0x36b   : > { %v3800_v13 = vpop.eup %3799  ;;  %v2200_v27 = vadd.f32 1.0, %v3798_v36  ;;  %3819 = vpow2.f32 %v2162_v16  ;;  %v2111_v55 = vmin.f32 %v5137_v0, 20.0  ;;  %v2112_v51 = vmin.f32 %v5140_v43, 20.0 }
 0x36c   : > { %v2354_v39 = vmul.f32 %v3800_v13, %v3175_v2  ;;  %v3802_v62 = vpop.eup %3801  ;;  %3821 = vpow2.f32 %v2164_v25  ;;  %v2353_v12 = vmul.f32 %v3796_v33, %v5103_v4  ;;  %v2113_v15 = vmin.f32 %v5144_v56, 20.0  ;;  %v2079_v33 = vpop.f32.mrf.mxu0 }
 0x36d   : > { %v2232_v40 = vmul.f32 %v2200_v27, %v2200_v27  ;;  %v3804_v53 = vpop.eup %3803  ;;  %v2355_v9 = vmul.f32 %v3802_v62, %v3176_v45  ;;  %v2166_v2 = vmul.f32 1.442695, %v2111_v55  ;;  %v2168_v11 = vmul.f32 1.442695, %v2112_v51 }
 0x36e   : > { %v2386_v57 = vmul.f32 %v2354_v39, %v5038_v3  ;;  %v2201_v5 = vadd.f32 1.0, %v3804_v53  ;;  %v5153_v10 = vpack.c.bf16 %v2383_v17, %v2381_v50  ;;  %v2384_v32 = vmul.f32 %v2352_v61, %v5023_v49  ;;  %v2081_v55 = vpop.f32.mrf.mxu0 }
 0x36f   : > { %v2296_v7 = vadd.f32 1.0, %v2232_v40  ;;  %v3806_v38 = vpop.eup %3805  ;;  %v3180_v35 = vadd.f32 -1.0, %v2231_v20  ;;  %3823 = vpow2.f32 %v2166_v2  ;;  %v2170_v4 = vmul.f32 1.442695, %v2113_v15 }
 0x370   : > { %v3808_v14 = vpop.eup %3807  ;;  %v2233_v52 = vmul.f32 %v2201_v5, %v2201_v5  ;;  %v2114_v45 = vmin.f32 %v5148_v41, 20.0  ;;  %v2385_v3 = vmul.f32 %v2353_v12, %v5030_v48  ;;  %v2387_v28 = vmul.f32 %v2355_v9, %v5041_v60 }
 0x371   : > { %3825 = vrcp.f32 %v2296_v7  ;;  %v3810_v59 = vpop.eup %3809  ;;  %v2202_v36 = vadd.f32 1.0, %v3808_v14  ;;  %v5159_v17 = vpack.c.bf16 %v2386_v57, %v2384_v32  ;;  %v3181_v49 = vadd.f32 -1.0, %v2232_v40 }
 0x372   : > { %3827 = vpow2.f32 %v2168_v11  ;;  %v2297_v20 = vadd.f32 1.0, %v2233_v52  ;;  %v2356_v16 = vmul.f32 %v3806_v38, %v5122_v47  ;;  %v2172_v27 = vmul.f32 1.442695, %v2114_v45 }
 0x373   : > { %v3812_v50 = vpop.eup %3811  ;;  %3829 = vpow2.f32 %v2170_v4  ;;  %v2234_v13 = vmul.f32 %v2202_v36, %v2202_v36  ;;  %v5163_v25 = vadd.f32 %v2075_v22, %v4986_v42  ;;  %v2357_v48 = vmul.f32 %v3810_v59, %v5125_v19 }
 0x374   : > { %v3814_v61 = vpop.eup %3813  ;;  %3831 = vrcp.f32 %v2297_v20  ;;  %v5167_v39 = vadd.f32 %v2079_v33, %v4983_v23  ;;  %v5169_v40 = vpack.c.bf16 %v2387_v28, %v2385_v3  ;;  %v2358_v51 = vmul.f32 %v3812_v50, %v5130_v21  ;;  %v2083_v50 = vpop.f32.mrf.mxu0 }
 0x375   : > { %v2203_v60 = vadd.f32 1.0, %v3814_v61  ;;  %v3816_v62 = vpop.eup %3815  ;;  %v2298_v53 = vadd.f32 1.0, %v2234_v13  ;;  %3833 = vpow2.f32 %v2172_v27  ;;  %v2115_v22 = vmin.f32 %v5163_v25, 20.0 }
 0x376   : > { %v2204_v12 = vadd.f32 1.0, %v3816_v62  ;;  %v2116_v9 = vmin.f32 %v5167_v39, 20.0  ;;  %v2388_v2 = vmul.f32 %v2356_v16, %v5046_v8  ;;  %v5175_v15 = vadd.f32 -1.0, %v2233_v52 }
 0x377   : > { %v2235_v47 = vmul.f32 %v2203_v60, %v2203_v60  ;;  %v3818_v19 = vpop.eup %3817  ;;  %3835 = vrcp.f32 %v2298_v53  ;;  %v5178_v57 = vadd.f32 %v2081_v55, %v4986_v42  ;;  %v2389_v21 = vmul.f32 %v2357_v48, %v5053_v63 }
 0x378   : > { %v3820_v7 = vpop.eup %3819  ;;  %v2236_v11 = vmul.f32 %v2204_v12, %v2204_v12  ;;  %v2174_v38 = vmul.f32 1.442695, %v2115_v22  ;;  %v2390_v14 = vmul.f32 %v2358_v51, %v5058_v24  ;;  %v2176_v45 = vmul.f32 1.442695, %v2116_v9  ;;  %v2085_v9 = vpop.f32.mrf.mxu0 }
 0x379   : > { %v2299_v5 = vadd.f32 1.0, %v2235_v47  ;;  %v3822_v32 = vpop.eup %3821  ;;  %v2205_v4 = vadd.f32 1.0, %v3820_v7  ;;  %v2117_v33 = vmin.f32 %v5178_v57, 20.0  ;;  %v2359_v8 = vmul.f32 %v3818_v19, %v3180_v35 }
 0x37a   : > { %v2300_v52 = vadd.f32 1.0, %v2236_v11  ;;  %v2206_v59 = vadd.f32 1.0, %v3822_v32  ;;  %v3183_v3 = vadd.f32 -1.0, %v2234_v13  ;;  %v2425_v61 = vunpack.c.l.bf16 %v5101_v37 }
 0x37b   : > { %3837 = vrcp.f32 %v2299_v5  ;;  %v2237_v28 = vmul.f32 %v2205_v4, %v2205_v4  ;;  %v2178_v36 = vmul.f32 1.442695, %v2117_v33  ;;  %v2426_v24 = vunpack.c.l.bf16 %v5106_v6 }
 0x37c   : > { %3839 = vpow2.f32 %v2174_v38  ;;  %v3824_v63 = vpop.eup %3823  ;;  %v2238_v20 = vmul.f32 %v2206_v59, %v2206_v59  ;;  %v5185_v27 = vpack.c.bf16 %v2390_v14, %v2388_v2  ;;  %v2391_v13 = vmul.f32 %v2359_v8, %v5062_v30 }
 0x37d   : > { %3841 = vrcp.f32 %v2300_v52  ;;  %v2301_v48 = vadd.f32 1.0, %v2237_v28  ;;  %v2207_v35 = vadd.f32 1.0, %v3824_v63  ;;  %v3184_v55 = vadd.f32 -1.0, %v2235_v47 }
 0x37e   : > { %v3826_v16 = vpop.eup %3825  ;;  %3843 = vpow2.f32 %v2176_v45  ;;  %v2302_v62 = vadd.f32 1.0, %v2238_v20  ;;  %v2468_v2 = vmul.f32 %v5065_v46, %v2425_v61  ;;  %v2469_v7 = vmul.f32 %v5068_v29, %v2426_v24 }
 0x37f   : > { %v3828_v60 = vpop.eup %3827  ;;  %3845 = vpow2.f32 %v2178_v36  ;;  %v2360_v53 = vmul.f32 %v3826_v16, %v3181_v49  ;;  %v2239_v12 = vmul.f32 %v2207_v35, %v2207_v35  ;;  %v3185_v38 = vadd.f32 -1.0, %v2236_v11 }
 0x380   : > { %v3830_v51 = vpop.eup %3829  ;;  %3847 = vrcp.f32 %v2301_v48  ;;  %v2208_v22 = vadd.f32 1.0, %v3828_v60  ;;  %v5191_v30 = vadd.f32 %v2083_v50, %v4983_v23  ;;  %v5193_v4 = vpack.c.bf16 %v2391_v13, %v2389_v21 }
 0x381   : > { %3849 = vrcp.f32 %v2302_v62  ;;  %v2209_v19 = vadd.f32 1.0, %v3830_v51  ;;  %v3832_v5 = vpop.eup %3831  ;;  %v2303_v32 = vadd.f32 1.0, %v2239_v12  ;;  %v2500_v45 = vadd.f32 %v2469_v7, %v2468_v2 }
 0x382   : > { %v2240_v14 = vmul.f32 %v2208_v22, %v2208_v22  ;;  %v3834_v47 = vpop.eup %3833  ;;  %v5196_v33 = vadd.f32 %v2085_v9, %v4986_v42  ;;  %v3186_v8 = vadd.f32 -1.0, %v2237_v28  ;;  %v2392_v11 = vmul.f32 %v2360_v53, %v5075_v1 }
 0x383   : > { %v2241_v49 = vmul.f32 %v2209_v19, %v2209_v19  ;;  %3851 = vrcp.f32 %v2303_v32  ;;  %v2210_v59 = vadd.f32 1.0, %v3834_v47  ;;  %v3187_v63 = vadd.f32 -1.0, %v2238_v20  ;;  %2501 = vadd.xlane.f32.xlu0 %v2500_v45 }
 0x384   : > { %v2304_v52 = vadd.f32 1.0, %v2240_v14  ;;  %v3836_v36 = vpop.eup %3835  ;;  %v2118_v23 = vmin.f32 %v5191_v30, 20.0  ;;  %v3188_v50 = vadd.f32 -1.0, %v2239_v12  ;;  %v2119_v24 = vmin.f32 %v5196_v33, 20.0 }
 0x385   : > { %v2305_v61 = vadd.f32 1.0, %v2241_v49  ;;  %v2242_v21 = vmul.f32 %v2210_v59, %v2210_v59  ;;  %v2361_v42 = vmul.f32 %v3832_v5, %v5175_v15  ;;  %v2427_v28 = vunpack.c.h.bf16 %v5101_v37 }
 0x386   : > { %3853 = vrcp.f32 %v2304_v52  ;;  %v2180_v16 = vmul.f32 1.442695, %v2118_v23  ;;  %v2428_v48 = vunpack.c.h.bf16 %v5106_v6  ;;  %v2362_v60 = vmul.f32 %v3836_v36, %v3183_v3 }
 0x387   : > { %3855 = vrcp.f32 %v2305_v61  ;;  %v2306_v1 = vadd.f32 1.0, %v2242_v21  ;;  %v2182_v20 = vmul.f32 1.442695, %v2119_v24  ;;  %v2470_v51 = vmul.f32 %v5065_v46, %v2427_v28 }
 0x388   : > { %v3838_v35 = vpop.eup %3837  ;;  %3857 = vpow2.f32 %v2180_v16  ;;  %v2471_v53 = vmul.f32 %v5068_v29, %v2428_v48  ;;  %v3189_v22 = vadd.f32 -1.0, %v2240_v14  ;;  %v2429_v37 = vunpack.c.l.bf16 %v5128_v58 }
 0x389   : > { %v3840_v13 = vpop.eup %3839  ;;  %v2363_v62 = vmul.f32 %v3838_v35, %v3184_v55  ;;  %3859 = vrcp.f32 %v2306_v1  ;;  %v2393_v6 = vmul.f32 %v2361_v42, %v5086_v44  ;;  %v5208_v3 = vadd.f32 -1.0, %v2241_v49 }
 0x38a   : > { %v3842_v12 = vpop.eup %3841  ;;  %v2211_v15 = vadd.f32 1.0, %v3840_v13  ;;  %3861 = vpow2.f32 %v2182_v20  ;;  %v2503_v19 = vadd.f32 %v2471_v53, %v2470_v51  ;;  %v2394_v55 = vmul.f32 %v2362_v60, %v5091_v54 }
 0x38b   : > { %v3844_v9 = vpop.eup %3843  ;;  %v2430_v32 = vunpack.c.l.bf16 %v5153_v10  ;;  %v2395_v14 = vmul.f32 %v2363_v62, %v5094_v34  ;;  %v2364_v45 = vmul.f32 %v3842_v12, %v3185_v38  ;;  %v2472_v59 = vmul.f32 %v5065_v46, %v2429_v37 }
 0x38c   : > { %v3846_v2 = vpop.eup %3845  ;;  %v2243_v7 = vmul.f32 %v2211_v15, %v2211_v15  ;;  %v2212_v5 = vadd.f32 1.0, %v3844_v9  ;;  %2504 = vadd.xlane.f32.xlu0 %v2503_v19  ;;  %v2431_v23 = vunpack.c.h.bf16 %v5128_v58  ;;  %v2432_v16 = vunpack.c.h.bf16 %v5153_v10 }
 0x38d   : > { %v3848_v47 = vpop.eup %3847  ;;  %v2213_v52 = vadd.f32 1.0, %v3846_v2  ;;  %v2473_v42 = vmul.f32 %v5068_v29, %v2430_v32  ;;  %v5221_v34 = vpack.c.bf16 %v2394_v55, %v2392_v11  ;;  %v3191_v38 = vadd.f32 -1.0, %v2242_v21 }
 0x38e   : > { %v3850_v44 = vpop.eup %3849  ;;  %v2365_v49 = vmul.f32 %v3848_v47, %v3186_v8  ;;  %v2307_v36 = vadd.f32 1.0, %v2243_v7  ;;  %v5214_v61 = vmul.f32 %v2212_v5, %v2212_v5  ;;  %v5224_v8 = vpack.c.bf16 %v2395_v14, %v2393_v6 }
 0x38f   : > { %v2366_v54 = vmul.f32 %v3850_v44, %v3187_v63  ;;  %v5217_v24 = vmul.f32 %v2213_v52, %v2213_v52  ;;  %v2396_v35 = vmul.f32 %v2364_v45, %v5109_v31  ;;  %v3192_v60 = vadd.f32 -1.0, %v2243_v7 }
 0x390   : > { %3863 = vrcp.f32 %v2307_v36  ;;  %v2308_v28 = vadd.f32 1.0, %v5214_v61  ;;  %v3852_v48 = vpop.eup %3851  ;;  %v2506_v58 = vadd.f32 %v2473_v42, %v2472_v59  ;;  %v2475_v10 = vmul.f32 %v5068_v29, %v2432_v16 }
 0x391   : > { %v2398_v63 = vmul.f32 %v2366_v54, %v5119_v26  ;;  %v2367_v1 = vmul.f32 %v3852_v48, %v3188_v50  ;;  %v2309_v20 = vadd.f32 1.0, %v5217_v24  ;;  %v2397_v21 = vmul.f32 %v2365_v49, %v5116_v18 }
 0x392   : > { %2507 = vadd.xlane.f32.xlu1 %v2506_v58  ;;  %v2474_v13 = vmul.f32 %v5065_v46, %v2431_v23  ;;  %v2435_v62 = vunpack.c.h.bf16 %v5159_v17  ;;  %v2436_v51 = vunpack.c.h.bf16 %v5169_v40  ;;  %3865 = vrcp.f32 %v2308_v28 }
 0x393   : > { %v3854_v11 = vpop.eup %3853  ;;  %v2399_v31 = vmul.f32 %v2367_v1, %v5137_v0  ;;  %v2433_v26 = vunpack.c.l.bf16 %v5159_v17  ;;  %v2434_v18 = vunpack.c.l.bf16 %v5169_v40  ;;  %v5239_v6 = vpack.c.bf16 %v2398_v63, %v2396_v35 }
 0x394   : > { %v2368_v53 = vmul.f32 %v3854_v11, %v3189_v22  ;;  %v3856_v50 = vpop.eup %3855  ;;  %v2509_v12 = vadd.f32 %v2475_v10, %v2474_v13  ;;  %v2478_v15 = vmul.f32 %v5065_v46, %v2435_v62  ;;  %v2479_v37 = vmul.f32 %v5068_v29, %v2436_v51 }
 0x395   : > { %v3858_v9 = vpop.eup %3857  ;;  %v5241_v19 = vpack.c.bf16 %v2399_v31, %v2397_v21  ;;  %3867 = vrcp.f32 %v2309_v20  ;;  %v2439_v0 = vunpack.c.h.bf16 %v5185_v27  ;;  %v2476_v55 = vmul.f32 %v5065_v46, %v2433_v26 }
 0x396   : > { %v3860_v22 = vpop.eup %3859  ;;  %v2214_v2 = vadd.f32 1.0, %v3858_v9  ;;  %2510 = vadd.xlane.f32.xlu1 %v2509_v12  ;;  %v2515_v17 = vadd.f32 %v2479_v37, %v2478_v15  ;;  %v2477_v7 = vmul.f32 %v5068_v29, %v2434_v18  ;;  %v2400_v32 = vmul.f32 %v2368_v53, %v5140_v43 }
 0x397   : > { %v3862_v5 = vpop.eup %3861  ;;  %v2370_v40 = vmul.f32 %v3860_v22, %v3191_v38  ;;  %v2440_v47 = vunpack.c.h.bf16 %v5193_v4  ;;  %v2437_v14 = vunpack.c.l.bf16 %v5185_v27  ;;  %v2438_v44 = vunpack.c.l.bf16 %v5193_v4 }
 0x398   : > { %v5249_v45 = vmul.f32 %v2214_v2, %v2214_v2  ;;  %v2215_v52 = vadd.f32 1.0, %v3862_v5  ;;  %v2512_v59 = vadd.f32 %v2477_v7, %v2476_v55  ;;  %v2482_v36 = vmul.f32 %v5065_v46, %v2439_v0 }
 0x399   : > { %v2402_v49 = vmul.f32 %v2370_v40, %v5148_v41  ;;  %v2483_v23 = vmul.f32 %v5068_v29, %v2440_v47  ;;  %v2443_v54 = vunpack.c.h.bf16 %v5221_v34  ;;  %v2480_v27 = vmul.f32 %v5065_v46, %v2437_v14 }
 0x39a   : > { %v2310_v43 = vadd.f32 1.0, %v5249_v45  ;;  %v2247_v42 = vmul.f32 %v2215_v52, %v2215_v52  ;;  %2516 = vadd.xlane.f32.xlu1 %v2515_v17  ;;  %2513 = vadd.xlane.f32.xlu0 %v2512_v59  ;;  %v2481_v16 = vmul.f32 %v5068_v29, %v2438_v44  ;;  %v2369_v38 = vmul.f32 %v3856_v50, %v5208_v3 }
 0x39b   : > { %v2420_v4 = vpack.c.bf16 %v2402_v49, %v2400_v32  ;;  %v2521_v28 = vadd.f32 %v2483_v23, %v2482_v36  ;;  %v2444_v41 = vunpack.c.h.bf16 %v5224_v8  ;;  %v2486_v63 = vmul.f32 %v5065_v46, %v2443_v54 }
 0x39c   : > { %3869 = vrcp.f32 %v2310_v43  ;;  %v2311_v35 = vadd.f32 1.0, %v2247_v42  ;;  %v2518_v58 = vadd.f32 %v2481_v16, %v2480_v27  ;;  %v2441_v10 = vunpack.c.l.bf16 %v5221_v34 }
 0x39d   : > { %v3864_v48 = vpop.eup %3863  ;;  %v2487_v20 = vmul.f32 %v5068_v29, %v2444_v41  ;;  %v2442_v11 = vunpack.c.l.bf16 %v5224_v8  ;;  %v2447_v3 = vunpack.c.h.bf16 %v5239_v6  ;;  %v2448_v21 = vunpack.c.h.bf16 %v5241_v19 }
 0x39e   : > { %v2371_v1 = vmul.f32 %v3864_v48, %v3192_v60  ;;  %3871 = vrcp.f32 %v2311_v35  ;;  %2522 = vadd.xlane.f32.xlu1 %v2521_v28  ;;  %2519 = vadd.xlane.f32.xlu0 %v2518_v58  ;;  %v2445_v13 = vunpack.c.l.bf16 %v5239_v6  ;;  %v2401_v62 = vmul.f32 %v2369_v38, %v5144_v56 }
 0x39f   : > { %v2527_v60 = vadd.f32 %v2487_v20, %v2486_v63  ;;  %v3866_v31 = vpop.eup %3865  ;;  %v2484_v53 = vmul.f32 %v5065_v46, %v2441_v10  ;;  %v2485_v34 = vmul.f32 %v5068_v29, %v2442_v11  ;;  %v2490_v8 = vmul.f32 %v5065_v46, %v2447_v3 }
 0x3a0   : > { %v2403_v51 = vmul.f32 %v2371_v1, %v5163_v25  ;;  %v2491_v26 = vmul.f32 %v5068_v29, %v2448_v21  ;;  %v2446_v12 = vunpack.c.l.bf16 %v5241_v19  ;;  %v2488_v56 = vmul.f32 %v5065_v46, %v2445_v13 }
 0x3a1   : > { %v2524_v37 = vadd.f32 %v2485_v34, %v2484_v53  ;;  %v2451_v25 = vunpack.c.h.bf16 %v2420_v4  ;;  %v2449_v0 = vunpack.c.l.bf16 %v2420_v4  ;;  %v3193_v7 = vadd.f32 -1.0, %v5214_v61 }
 0x3a2   : > { %v2421_v50 = vpack.c.bf16 %v2403_v51, %v2401_v62  ;;  %v3868_v15 = vpop.eup %3867  ;;  %2528 = vadd.xlane.f32.xlu1 %v2527_v60  ;;  %v2533_v18 = vadd.f32 %v2491_v26, %v2490_v8  ;;  %v2489_v9 = vmul.f32 %v5068_v29, %v2446_v12  ;;  %v3194_v47 = vadd.f32 -1.0, %v5217_v24 }
 0x3a3   : > { %2525 = vadd.xlane.f32.xlu0 %v2524_v37  ;;  %v2494_v17 = vmul.f32 %v5065_v46, %v2451_v25  ;;  %v2492_v5 = vmul.f32 %v5065_v46, %v2449_v0  ;;  %v2372_v40 = vmul.f32 %v3866_v31, %v3193_v7  ;;  %v3195_v14 = vadd.f32 -1.0, %v5249_v45 }
 0x3a4   : > { %v2452_v6 = vunpack.c.h.bf16 %v2421_v50  ;;  %v2450_v22 = vunpack.c.l.bf16 %v2421_v50  ;;  %v2530_v2 = vadd.f32 %v2489_v9, %v2488_v56  ;;  %v2373_v44 = vmul.f32 %v3868_v15, %v3194_v47 }
 0x3a5   : > { %v3196_v36 = vadd.f32 -1.0, %v2247_v42  ;;  %v2404_v54 = vmul.f32 %v2372_v40, %v5167_v39 }
 0x3a6   : > { %v2495_v55 = vmul.f32 %v5068_v29, %v2452_v6  ;;  %v2493_v19 = vmul.f32 %v5068_v29, %v2450_v22  ;;  %2534 = vadd.xlane.f32.xlu1 %v2533_v18  ;;  %v2405_v27 = vmul.f32 %v2373_v44, %v5178_v57 }
 0x3a7   : > { %2531 = vadd.xlane.f32.xlu0 %v2530_v2 }
 0x3a8   : > { %v2539_v32 = vadd.f32 %v2495_v55, %v2494_v17  ;;  %v2536_v52 = vadd.f32 %v2493_v19, %v2492_v5 }
 0x3a9   : > { %v3870_v59 = vpop.eup %3869 }
 0x3aa   : > { %v2374_v49 = vmul.f32 %v3870_v59, %v3195_v14  ;;  %2540 = vadd.xlane.f32.xlu1 %v2539_v32 }
 0x3ab   : > { %v3872_v23 = vpop.eup %3871  ;;  %2537 = vadd.xlane.f32.xlu0 %v2536_v52 }
 0x3ac   : > { %v2406_v61 = vmul.f32 %v2374_v49, %v5191_v30  ;;  %v2375_v43 = vmul.f32 %v3872_v23, %v3196_v36 }
 0x3ae   : > { %v2422_v24 = vpack.c.bf16 %v2406_v61, %v2404_v54  ;;  %v2407_v45 = vmul.f32 %v2375_v43, %v5196_v33  ;;  %v3197_v33 = vld [vmem:[%s544_s19] ss:$0 sm:$0xff] }
 0x3b0   : > { %v2423_v16 = vpack.c.bf16 %v2407_v45, %v2405_v27  ;;  %v2455_v38 = vunpack.c.h.bf16 %v2422_v24  ;;  %v2453_v4 = vunpack.c.l.bf16 %v2422_v24 }
 0x3b2   : > { %v2456_v28 = vunpack.c.h.bf16 %v2423_v16  ;;  %v2454_v42 = vunpack.c.l.bf16 %v2423_v16  ;;  %v2498_v41 = vmul.f32 %v5065_v46, %v2455_v38  ;;  %v2496_v30 = vmul.f32 %v5065_v46, %v2453_v4 }
 0x3b4   : > { %v2499_v39 = vmul.f32 %v5068_v29, %v2456_v28  ;;  %v2497_v48 = vmul.f32 %v5068_v29, %v2454_v42 }
 0x3b6   : > { %v2545_v35 = vadd.f32 %v2499_v39, %v2498_v41  ;;  %v2542_v57 = vadd.f32 %v2497_v48, %v2496_v30 }
 0x3b8   : > { %2546 = vadd.xlane.f32.xlu1 %v2545_v35  ;;  %2543 = vadd.xlane.f32.xlu0 %v2542_v57 }
 0x40c   : > { %v2502_v58 = vpop.xlane.xlu0 %2501 }
 0x40d   : > { %v2555_v63 = vadd.f32 %v3197_v33, %v2502_v58 }
 0x40f   : > { %2572 = vst.msk [vmem:[%s5297_s9] sm:$0xff] %vm2571_vm2, %v2555_v63 }
 0x415   : > { %v2505_v46 = vpop.xlane.xlu0 %2504 }
 0x416   : > { %v2556_v29 = vadd.f32 %v3197_v33, %v2505_v46 }
 0x418   : > { %2573 = vst.msk [vmem:[%s5297_s9 + $0x8] sm:$0xff] %vm2571_vm2, %v2556_v29 }
 0x41b   : > { %v2508_v1 = vpop.xlane.xlu1 %2507 }
 0x41c   : > { %v2557_v20 = vadd.f32 %v3197_v33, %v2508_v1 }
 0x41e   : > { %2574 = vst.msk [vmem:[%s5297_s9 + $0x10] sm:$0xff] %vm2571_vm2, %v2557_v20 }
 0x41f   : > { %v2511_v10 = vpop.xlane.xlu1 %2510 }
 0x420   : > { %v2558_v11 = vadd.f32 %v3197_v33, %v2511_v10 }
 0x422   : > { %2575 = vst.msk [vmem:[%s5297_s9 + $0x18] sm:$0xff] %vm2571_vm2, %v2558_v11 }
 0x423   : > { %v2517_v3 = vpop.xlane.xlu1 %2516  ;;  %v2514_v21 = vpop.xlane.xlu0 %2513 }
 0x424   : > { %v2560_v13 = vadd.f32 %v3197_v33, %v2517_v3  ;;  %v2559_v62 = vadd.f32 %v3197_v33, %v2514_v21 }
 0x426   : > { %2577 = vst.msk [vmem:[%s5297_s9 + $0x28] sm:$0xff] %vm2571_vm2, %v2560_v13  ;;  %2576 = vst.msk [vmem:[%s5297_s9 + $0x20] sm:$0xff] %vm2571_vm2, %v2559_v62 }
 0x427   : > { %v2523_v51 = vpop.xlane.xlu1 %2522  ;;  %v2520_v60 = vpop.xlane.xlu0 %2519 }
 0x428   : > { %v2562_v31 = vadd.f32 %v3197_v33, %v2523_v51  ;;  %v2561_v53 = vadd.f32 %v3197_v33, %v2520_v60 }
 0x42a   : > { %2579 = vst.msk [vmem:[%s5297_s9 + $0x38] sm:$0xff] %vm2571_vm2, %v2562_v31  ;;  %2578 = vst.msk [vmem:[%s5297_s9 + $0x30] sm:$0xff] %vm2571_vm2, %v2561_v53 }
 0x42b   : > { %v2529_v34 = vpop.xlane.xlu1 %2528 }
 0x42c   : > { %v2564_v8 = vadd.f32 %v3197_v33, %v2529_v34  ;;  %v2526_v26 = vpop.xlane.xlu0 %2525 }
 0x42d   : > { %v2563_v50 = vadd.f32 %v3197_v33, %v2526_v26 }
 0x42e   : > { %2581 = vst.msk [vmem:[%s5297_s9 + $0x48] sm:$0xff] %vm2571_vm2, %v2564_v8 }
 0x42f   : > { %v2535_v12 = vpop.xlane.xlu1 %2534  ;;  %2580 = vst.msk [vmem:[%s5297_s9 + $0x40] sm:$0xff] %vm2571_vm2, %v2563_v50 }
 0x430   : > { %v2566_v15 = vadd.f32 %v3197_v33, %v2535_v12  ;;  %v2532_v37 = vpop.xlane.xlu0 %2531 }
 0x431   : > { %v2565_v18 = vadd.f32 %v3197_v33, %v2532_v37 }
 0x432   : > { %2583 = vst.msk [vmem:[%s5297_s9 + $0x58] sm:$0xff] %vm2571_vm2, %v2566_v15 }
 0x433   : > { %v2541_v56 = vpop.xlane.xlu1 %2540  ;;  %2582 = vst.msk [vmem:[%s5297_s9 + $0x50] sm:$0xff] %vm2571_vm2, %v2565_v18 }
 0x434   : > { %v2568_v25 = vadd.f32 %v3197_v33, %v2541_v56  ;;  %v2538_v9 = vpop.xlane.xlu0 %2537 }
 0x435   : > { %v2567_v6 = vadd.f32 %v3197_v33, %v2538_v9 }
 0x436   : > { %2585 = vst.msk [vmem:[%s5297_s9 + $0x68] sm:$0xff] %vm2571_vm2, %v2568_v25 }
 0x437   : > { %2584 = vst.msk [vmem:[%s5297_s9 + $0x60] sm:$0xff] %vm2571_vm2, %v2567_v6 }
 0x440   : > { %2594 = sbr.rel (!%p4218_p12) target bundleno = 1134 (0x46e), region = 68 }
 0x441   : > { %v2547_v0 = vpop.xlane.xlu1 %2546  ;;  %v2544_v22 = vpop.xlane.xlu0 %2543 }
 0x442   : > { %v2570_v2 = vadd.f32 %v3197_v33, %v2547_v0  ;;  %v2569_v17 = vadd.f32 %v3197_v33, %v2544_v22 }
 0x444   : > { %2587 = vst.msk [vmem:[%s5297_s9 + $0x78] sm:$0xff] %vm2571_vm2, %v2570_v2  ;;  %2586 = vst.msk [vmem:[%s5297_s9 + $0x70] sm:$0xff] %vm2571_vm2, %v2569_v17 }
 0x445   : > { %s5538_s20 = smov (!%p2597_p7, %s2596_s20), 16 }
 0x446   : > { %s3200_s8 = sshll.u32 %s5538_s20, 7 }
 0x447   : > { %p3203_p10 = scmp.eq.s32.totalorder %s3200_s8, 0 }
 0x448   : > { %s5345_s13 = sshrl.u32 (!%p3203_p10), %s5538_s20, 4 }
 0x449   : > { %2607 = sbr.rel (%p3203_p10) target bundleno = 1134 (0x46e), region = 72  ;;  %p3204_p12 = scmp.le.s32.totalorder (!%p3203_p10), %s5345_s13, 0 }
 0x44e   : > { %2886 = sbr.rel (%p3204_p12) target bundleno = 1117 (0x45d), region = 184  ;;  %s5517_s15 = smov (!%p3204_p12), %s5342_s22 }
 0x44f   : > { %s5518_s10 = smov (!%p3204_p12), %s5297_s9  ;;  %s5354_s25 = smov (!%p3204_p12), 0  }
 0x450   : > { %s5356_s27 = smov (!%p3204_p12), 0  }
 0x453 LB: >> { %v2700_v55 = vld [vmem:[%s4055_s10] sm:$0xff]  ;;  %v2702_v19 = vld [vmem:[%s4055_s10 + $0x8] sm:$0xff]  ;;  %v2704_v7 = vld [vmem:[%s4055_s10 + $0x10] sm:$0xff]  ;;  %s2732_s14 = sadd.s32 1, %s4059_s25  ;;  %s2694_s27 = sadd.s32 1, %s4063_s27   ;;  %s4063_s27 = sphi %s5356_s27, %s2694_s27   ;;  %s4059_s25 = sphi %s5354_s25, %s5519_s25   ;;  %s4055_s10 = sphi %s5518_s10, %s2737_s10   ;;  %s4051_s15 = sphi %s5517_s15, %s2738_s15  }
 0x454   : >> { %2701 = vst [vmem:[%s4051_s15] sm:$0xff] %v2700_v55  ;;  %2703 = vst [vmem:[%s4051_s15 + $0x8] sm:$0xff] %v2702_v19  ;;  %v2706_v5 = vld [vmem:[%s4055_s10 + $0x18] sm:$0xff]  ;;  %v2708_v32 = vld [vmem:[%s4055_s10 + $0x20] sm:$0xff]  ;;  %p2733_p11 = scmp.ge.s32.totalorder %s2732_s14, %s5345_s13  ;;  %p2693_p13 = scmp.ge.s32.totalorder %s2694_s27, %s5345_s13 }
 0x455   : >> { %2705 = vst [vmem:[%s4051_s15 + $0x10] sm:$0xff] %v2704_v7  ;;  %v2710_v40 = vld [vmem:[%s4055_s10 + $0x28] sm:$0xff]  ;;  %2707 = vst [vmem:[%s4051_s15 + $0x18] sm:$0xff] %v2706_v5  ;;  %v2712_v47 = vld [vmem:[%s4055_s10 + $0x30] sm:$0xff] }
 0x456   : >> { %2709 = vst [vmem:[%s4051_s15 + $0x20] sm:$0xff] %v2708_v32  ;;  %2711 = vst [vmem:[%s4051_s15 + $0x28] sm:$0xff] %v2710_v40  ;;  %v2714_v14 = vld [vmem:[%s4055_s10 + $0x38] sm:$0xff]  ;;  %v2716_v52 = vld [vmem:[%s4055_s10 + $0x40] sm:$0xff]  ;;  %s5540_s14 = smov (%p2733_p11, %s2732_s14), 0 }
 0x457   : >> { %2713 = vst [vmem:[%s4051_s15 + $0x30] sm:$0xff] %v2712_v47  ;;  %2715 = vst [vmem:[%s4051_s15 + $0x38] sm:$0xff] %v2714_v14  ;;  %v2718_v59 = vld [vmem:[%s4055_s10 + $0x48] sm:$0xff]  ;;  %v2720_v44 = vld [vmem:[%s4055_s10 + $0x50] sm:$0xff]  ;;  %s3205_s23 = sshll.u32 %s5540_s14, 7  ;;  %s5519_s25 = smov %s5540_s14 }
 0x458   : >> { %2717 = vst [vmem:[%s4051_s15 + $0x40] sm:$0xff] %v2716_v52  ;;  %v2722_v49 = vld [vmem:[%s4055_s10 + $0x58] sm:$0xff]  ;;  %2719 = vst [vmem:[%s4051_s15 + $0x48] sm:$0xff] %v2718_v59  ;;  %v2724_v36 = vld [vmem:[%s4055_s10 + $0x60] sm:$0xff]  ;;  %2696 = sbr.rel (!%p2693_p13) target bundleno = 1107 (0x453), region = 190 }
 0x459   : >> { %2721 = vst [vmem:[%s4051_s15 + $0x50] sm:$0xff] %v2720_v44  ;;  %2723 = vst [vmem:[%s4051_s15 + $0x58] sm:$0xff] %v2722_v49  ;;  %v2726_v23 = vld [vmem:[%s4055_s10 + $0x68] sm:$0xff]  ;;  %v2728_v54 = vld [vmem:[%s4055_s10 + $0x70] sm:$0xff] }
 0x45a   : >> { %2725 = vst [vmem:[%s4051_s15 + $0x60] sm:$0xff] %v2724_v36  ;;  %2727 = vst [vmem:[%s4051_s15 + $0x68] sm:$0xff] %v2726_v23  ;;  %v2730_v61 = vld [vmem:[%s4055_s10 + $0x78] sm:$0xff]  ;;  %s2737_s10 = scalar_lea.vmem %s5297_s9, %s3205_s23 [#allocation6]  }
 0x45b   : >> { %2729 = vst [vmem:[%s4051_s15 + $0x70] sm:$0xff] %v2728_v54  ;;  %2731 = vst [vmem:[%s4051_s15 + $0x78] sm:$0xff] %v2730_v61  ;;  %s2738_s15 = scalar_lea.vmem %s5342_s22, %s3205_s23  }
 0x45d PF: > { %s5414_s29 = sand.u32 15, %s5538_s20   ;;  %s3217_s19 = sshll.u32 %s5345_s13, 7 }
 0x45e   : > { %s2743_s3 = scalar_lea.vmem %s5297_s9, %s3217_s19 [#allocation6]   ;;  %s2745_s30 = scalar_lea.vmem %s5342_s22, %s3217_s19  }
 0x45f   : > { %p3210_p3 = scmp.le.s32.totalorder %s5414_s29, 0 }
 0x460   : > { %s4065_s16 = smov (!%p3210_p3), %s2745_s30   ;;  %s4069_s11 = smov (!%p3210_p3), %s2743_s3  }
 0x461   : > { %2900 = sbr.rel (%p3210_p3) target bundleno = 1134 (0x46e), region = 195  ;;  %s4073_s26 = smov (!%p3210_p3), 0  }
 0x462   : > { %s4077_s8 = smov (!%p3210_p3), 0  }
 0x466 LB: >> { %v2755_v43 = vld [vmem:[%s4071_s11] sm:$0xff]  ;;  %s2757_s20 = sadd.s32 1, %s4075_s26  ;;  %s2749_s8 = sadd.s32 1, %s4079_s8   ;;  %s4079_s8 = sphi %s4077_s8, %s2749_s8   ;;  %s4075_s26 = sphi %s4073_s26, %s4074_s26   ;;  %s4071_s11 = sphi %s4069_s11, %s2762_s11   ;;  %s4067_s16 = sphi %s4065_s16, %s2763_s16  }
 0x467   : >> { %2756 = vst [vmem:[%s4067_s16] sm:$0xff] %v2755_v43  ;;  %p2758_p4 = scmp.ge.s32.totalorder %s2757_s20, %s5414_s29  ;;  %p2748_p5 = scmp.ge.s32.totalorder %s2749_s8, %s5414_s29 }
 0x469   : >> { %s5542_s20 = smov (%p2758_p4, %s2757_s20), 0  ;;  %2751 = sbr.rel (!%p2748_p5) target bundleno = 1126 (0x466), region = 201 }
 0x46a   : >> { %s3211_s9 = sshll.u32 %s5542_s20, 3  ;;  %s4074_s26 = smov %s5542_s20  }
 0x46b   : >> { %s2762_s11 = scalar_lea.vmem %s2743_s3, %s3211_s9 [#allocation6]   ;;  %s2763_s16 = scalar_lea.vmem %s2745_s30, %s3211_s9  }
 0x46e PF: > { %s25_s18 = sadd.s32 1, %s4047_s18   ;;  %s5520_s30 = sld [smem:[#allocation9_spill]] }
 0x46f   : > { %p22_p6 = scmp.ge.s32.totalorder %s25_s18, 6   ;;  %s5521_s10 = sld [smem:[#allocation15_spill]] }
 0x470   : > { %s5522_s24 = sld [smem:[#allocation10_spill]]  ;;  %s5527_s11 = smov %s4023_s12 }
 0x471   : > { %s5523_s13 = sld [smem:[#allocation14_spill]]  ;;  %s5529_s15 = smov %s4043_s17 }
 0x472   : > { %s5524_s14 = sld [smem:[#allocation11_spill]] }
 0x473   : > { %s5525_s16 = sld [smem:[#allocation12_spill]] }
 0x474   : > { %s5526_s21 = sld [smem:[#allocation13_spill]] }
 0x476   : > { %s5528_s12 = smov %s5522_s24  ;;  %24 = sbr.rel (!%p22_p6) target bundleno = 12 (0xc), region = 212 }
 0x47a   : > { %s5530_s17 = smov %s5526_s21 }
 0x47b   :  { %2779 = vsyncpa [#allocation3], 1 }
 0x47c   :  { %2781 = vsyncpa [#allocation3 + $0x1], 1 }
 0x47d   :  { %2782 = vsyncpa [#allocation5], 1 }
 0x47e   :  { %2784 = vsyncpa [#allocation5 + $0x1], 1 }

</bundles_post_ra>
